<compile_context>
chip_gen: v7x
topology: tpu7x:2x2x1
jax: 0.10.0
libtpu: 0.0.40
codegen_flags: <defaults>
</compile_context>

<pallas_src>
import jax
import jax.numpy as jnp
import numpy as np
from jax.experimental import pallas as pl
from jax.experimental.pallas import tpu as pltpu


def _round_up(x: int, m: int) -> int:
    return ((x + m - 1) // m) * m


# Fixed ordering of the 9 activations (row blocks of the packed weight matrix)
# and the 8 gradient outputs (column blocks of the packed weight matrix).
_IN_ORDER = ("orthography", "phonology", "semantics", "cleanup_phon", "cleanup_sem",
             "phon_2_sem", "sem_2_phon", "orth_2_sem", "orth_2_phon")
_OUT_ORDER = ("phonology", "semantics", "cleanup_phon", "cleanup_sem",
              "phon_2_sem", "sem_2_phon", "orth_2_sem", "orth_2_phon")


# ----------------------------------------------------------------------------
# Fused kernel builder: all packing metadata is baked in statically.
# ----------------------------------------------------------------------------
def _make_fused_kernel(in_row_off, in_dims, out_col_off, out_dims, state_idx, n_pad):
    n_in = len(in_dims)
    n_out = len(out_dims)

    def kernel(*refs):
        x_refs = refs[:n_in]
        w_ref = refs[n_in]
        b_ref = refs[n_in + 1]
        out_refs = refs[n_in + 2:n_in + 2 + n_out]

        tb = x_refs[0].shape[0]
        # One wide lane-dense f32 accumulator; per-input MXU dots against
        # sublane-aligned static row slices of the packed weight slab.
        acc = jnp.zeros((tb, n_pad), jnp.float32)
        for x_ref, roff, d in zip(x_refs, in_row_off, in_dims):
            acc += jnp.dot(x_ref[...], w_ref[roff:roff + d, :],
                           preferred_element_type=jnp.float32)
        z = jax.nn.sigmoid(acc + b_ref[...])
        # Per-unit state subtraction + store: no host-side slicing afterwards.
        for o_ref, coff, d, si in zip(out_refs, out_col_off, out_dims, state_idx):
            o_ref[...] = (z[:, coff:coff + d] - x_refs[si][...]).astype(o_ref.dtype)

    return kernel


def _choose_batch_tile(B: int, tb_max: int = 512) -> int:
    """Pick a batch-tile size that (a) never requires host-side batch padding,
    (b) is a multiple of 8 whenever it is smaller than B, (c) prefers >= 2 grid
    steps so v7x can shard the 'parallel' axis over both TensorCores, and
    (d) caps at tb_max rows (memory-bound: big tiles amortize the ~0.35us
    per-grid-step overhead)."""
    if B <= 8 or B % 8 != 0:
        return B                       # single full-extent block (always legal)
    target = min(tb_max, _round_up(pl.cdiv(B, 2), 8))
    tb = target
    while tb > 8 and B % tb != 0:      # shrink (by sublane quanta) until it divides B
        tb -= 8
    return tb


def fused_triangle_gradients(xs, w_packed, b_packed,
                             in_row_off, out_col_off, out_dims, state_idx):
    """xs: 9 arrays [B, d_k] in _IN_ORDER order. Returns 8 arrays [B, d_u] in
    _OUT_ORDER order."""
    B = int(xs[0].shape[0])
    in_dims = tuple(int(x.shape[1]) for x in xs)
    K_pack, Np = int(w_packed.shape[0]), int(w_packed.shape[1])

    tb = _choose_batch_tile(B)
    grid = (B // tb,)

    kernel = _make_fused_kernel(in_row_off, in_dims, out_col_off, out_dims,
                                state_idx, Np)

    # Activations: batch-tiled, full (small) last dim per tensor.
    x_specs = [pl.BlockSpec((tb, d), lambda i: (i, 0)) for d in in_dims]
    # Packed weights / bias: constant index_map -> fetched once, reused by every
    # batch tile.  (v7x scale-up: add pipeline_mode=pl.Buffered(1) here and/or
    # an N grid axis + vmem_limit_bytes once K_pack*Np*4 approaches 32 MiB.)
    w_spec = pl.BlockSpec((K_pack, Np), lambda i: (0, 0))
    b_spec = pl.BlockSpec((1, Np), lambda i: (0, 0))
    out_specs = [pl.BlockSpec((tb, d), lambda i: (i, 0)) for d in out_dims]
    out_shape = tuple(jax.ShapeDtypeStruct((B, d), jnp.float32) for d in out_dims)

    return pl.pallas_call(
        kernel,
        out_shape=out_shape,
        grid_spec=pltpu.PrefetchScalarGridSpec(
            num_scalar_prefetch=0,
            grid=grid,
            in_specs=x_specs + [w_spec, b_spec],
            out_specs=out_specs,
        ),
        compiler_params=pltpu.CompilerParams(
            dimension_semantics=("parallel",)),
    )(*xs, w_packed, b_packed)


# ----------------------------------------------------------------------------
# Deterministic parameter init (mirrors torch.nn.Linear shapes / init ranges)
# ----------------------------------------------------------------------------
def _init_linear(key, in_dim, out_dim):
    k = 1.0 / np.sqrt(in_dim)
    wkey, bkey = jax.random.split(key)
    # torch Linear weight is [out, in]; store transposed [in, out] for the kernel.
    w = jax.random.uniform(wkey, (in_dim, out_dim), jnp.float32, -k, k)
    b = jax.random.uniform(bkey, (1, out_dim), jnp.float32, -k, k)
    return w, b


def _init_operator(key, in_dims, out_dim):
    keys = jax.random.split(key, len(in_dims))
    ws, bs = [], []
    for kk, d in zip(keys, in_dims):
        w, b = _init_linear(kk, d, out_dim)
        ws.append(w)
        bs.append(b)
    return ws, bs


# ----------------------------------------------------------------------------
# TriangleModel in JAX/Pallas
# ----------------------------------------------------------------------------
class TriangleModelPallas:
    def __init__(self, orth_dim, phon_dim, sem_dim, phon_cleanup_dim,
                 sem_cleanup_dim, phon_2_sem_dim, sem_2_phon_dim,
                 orth_2_sem_dim, orth_2_phon_dim, learn_bias, lesions,
                 seed=0):
        # learn_bias only toggles grad tracking in torch; bias term is present.
        del learn_bias
        self.lesion = {k: (1 if k in lesions else 0)
                       for k in ("o2p", "o2s", "p2s", "s2p", "s2s", "p2p")}

        self.dims = {
            "orthography": orth_dim, "phonology": phon_dim, "semantics": sem_dim,
            "cleanup_phon": phon_cleanup_dim, "cleanup_sem": sem_cleanup_dim,
            "phon_2_sem": phon_2_sem_dim, "sem_2_phon": sem_2_phon_dim,
            "orth_2_sem": orth_2_sem_dim, "orth_2_phon": orth_2_phon_dim,
        }

        # (output_key, [input_keys], [lesion_keys]) -- mirrors the torch forward
        # wiring, including the duplicated o2p/o2s lesion on the direct
        # orthography term of the phonology / semantics units.
        self.units = [
            ("phonology",    ["cleanup_phon", "sem_2_phon", "orth_2_phon", "orthography"],
                             ["p2p", "s2p", "o2p", "o2p"]),
            ("semantics",    ["cleanup_sem", "phon_2_sem", "orth_2_sem", "orthography"],
                             ["s2s", "p2s", "o2s", "o2s"]),
            ("cleanup_phon", ["phonology"],   ["p2p"]),
            ("cleanup_sem",  ["semantics"],   ["s2s"]),
            ("phon_2_sem",   ["phonology"],   ["p2s"]),
            ("sem_2_phon",   ["semantics"],   ["s2p"]),
            ("orth_2_sem",   ["orthography"], ["o2s"]),
            ("orth_2_phon",  ["orthography"], ["o2p"]),
        ]

        root = jax.random.PRNGKey(seed)
        keys = jax.random.split(root, len(self.units))
        self.unit_params = {}
        for kk, (out_key, in_keys, _) in zip(keys, self.units):
            self.unit_params[out_key] = _init_operator(
                kk, [self.dims[k] for k in in_keys], self.dims[out_key])

        # ---- pack everything into one block-structured weight / bias --------
        # Row blocks (contraction axis) are 8-aligned so the kernel's static
        # row slices land on sublane-tile boundaries; the column axis is packed
        # densely and padded to a multiple of 128 so the accumulator / matmul
        # output (and MXU passes) stay lane-dense.
        self.in_row_off, cur = {}, 0
        for k in _IN_ORDER:
            self.in_row_off[k] = cur
            cur += _round_up(self.dims[k], 8)
        self.k_pack = cur                                   # multiple of 8

        self.out_col_off, cur = {}, 0
        for k in _OUT_ORDER:
            self.out_col_off[k] = cur
            cur += self.dims[k]
        self.n_total = cur
        self.n_pad = _round_up(self.n_total, 128)           # lane-dense slab

        w_np = np.zeros((self.k_pack, self.n_pad), np.float32)
        b_np = np.zeros((1, self.n_pad), np.float32)
        for out_key, in_keys, lesion_keys in self.units:
            ws, bs = self.unit_params[out_key]
            oc, od = self.out_col_off[out_key], self.dims[out_key]
            for in_key, w, b, lk in zip(in_keys, ws, bs, lesion_keys):
                scale = 1.0 - float(self.lesion[lk])
                if scale == 0.0:
                    continue  # static lesion elimination: term never computed
                ic, idim = self.in_row_off[in_key], self.dims[in_key]
                w_np[ic:ic + idim, oc:oc + od] += scale * np.asarray(w)
                b_np[0, oc:oc + od] += scale * np.asarray(b)[0]
        self.w_packed = jnp.asarray(w_np)
        self.b_packed = jnp.asarray(b_np)

        # Static metadata tuples consumed by the kernel builder.
        self._in_row_off_t = tuple(self.in_row_off[k] for k in _IN_ORDER)
        self._out_col_off_t = tuple(self.out_col_off[k] for k in _OUT_ORDER)
        self._out_dims_t = tuple(self.dims[k] for k in _OUT_ORDER)
        self._state_idx_t = tuple(_IN_ORDER.index(k) for k in _OUT_ORDER)

    def __call__(self, inputs):
        # `detach` has no numerical effect in a pure forward pass.
        xs = [inputs[k].astype(jnp.float32) for k in _IN_ORDER]
        outs = fused_triangle_gradients(
            xs, self.w_packed, self.b_packed,
            self._in_row_off_t, self._out_col_off_t,
            self._out_dims_t, self._state_idx_t)
        grads = {"orthography": jnp.zeros_like(inputs["orthography"])}
        for k, g in zip(_OUT_ORDER, outs):
            grads[k] = g
        return grads


# ----------------------------------------------------------------------------
# Pure-JAX reference (same math, no Pallas) for validation
# ----------------------------------------------------------------------------
def _ref_tai(xs, weights, biases, state, lesions):
    acc = jnp.zeros_like(state)
    for x, w, b, l in zip(xs, weights, biases, lesions):
        acc = acc + (1.0 - float(l)) * (x @ w + b)
    return jax.nn.sigmoid(acc) - state


if __name__ == "__main__":
    # Small, deterministic example shapes.  B=16 -> batch tile 8, grid=(2,)
    # so the "parallel" axis actually has >1 step (v7x dual-TC path exercised).
    B = 16
    orth_dim, phon_dim, sem_dim = 16, 24, 32
    phon_cleanup_dim, sem_cleanup_dim = 8, 8
    phon_2_sem_dim, sem_2_phon_dim = 16, 16
    orth_2_sem_dim, orth_2_phon_dim = 16, 16
    lesions = ["p2p"]  # exercise the static lesion-elimination path

    model = TriangleModelPallas(
        orth_dim, phon_dim, sem_dim, phon_cleanup_dim, sem_cleanup_dim,
        phon_2_sem_dim, sem_2_phon_dim, orth_2_sem_dim, orth_2_phon_dim,
        learn_bias=True, lesions=lesions, seed=0)

    key = jax.random.PRNGKey(0)
    ks = jax.random.split(key, 9)
    inputs = {
        "orthography": jax.random.normal(ks[0], (B, orth_dim), jnp.float32),
        "phonology": jax.random.normal(ks[1], (B, phon_dim), jnp.float32),
        "semantics": jax.random.normal(ks[2], (B, sem_dim), jnp.float32),
        "cleanup_phon": jax.random.normal(ks[3], (B, phon_cleanup_dim), jnp.float32),
        "cleanup_sem": jax.random.normal(ks[4], (B, sem_cleanup_dim), jnp.float32),
        "phon_2_sem": jax.random.normal(ks[5], (B, phon_2_sem_dim), jnp.float32),
        "sem_2_phon": jax.random.normal(ks[6], (B, sem_2_phon_dim), jnp.float32),
        "orth_2_sem": jax.random.normal(ks[7], (B, orth_2_sem_dim), jnp.float32),
        "orth_2_phon": jax.random.normal(ks[8], (B, orth_2_phon_dim), jnp.float32),
    }

    grads = model(inputs)
    jax.block_until_ready(grads)

    # Validate against pure-JAX reference (per-unit, un-packed parameters).
    ref = {"orthography": jnp.zeros_like(inputs["orthography"])}
    for out_key, in_keys, lesion_keys in model.units:
        ws, bs = model.unit_params[out_key]
        ref[out_key] = _ref_tai(
            [inputs[k] for k in in_keys], ws, bs, inputs[out_key],
            [model.lesion[lk] for lk in lesion_keys])

    for k in ref:
        np.testing.assert_allclose(np.asarray(grads[k]), np.asarray(ref[k]),
                                   atol=1e-5, rtol=1e-5)

    print("KERNEL_OK")
</pallas_src>

<mosaic_0001>
module attributes {stable_mosaic.version = 11 : i64} {
  func.func @kernel(%arg0: i32, %arg1: memref<8x16xf32, #tpu.memory_space<vmem>>, %arg2: memref<8x24xf32, #tpu.memory_space<vmem>>, %arg3: memref<8x32xf32, #tpu.memory_space<vmem>>, %arg4: memref<8x8xf32, #tpu.memory_space<vmem>>, %arg5: memref<8x8xf32, #tpu.memory_space<vmem>>, %arg6: memref<8x16xf32, #tpu.memory_space<vmem>>, %arg7: memref<8x16xf32, #tpu.memory_space<vmem>>, %arg8: memref<8x16xf32, #tpu.memory_space<vmem>>, %arg9: memref<8x16xf32, #tpu.memory_space<vmem>>, %arg10: memref<152x256xf32, #tpu.memory_space<vmem>>, %arg11: memref<1x256xf32, #tpu.memory_space<vmem>>, %arg12: memref<8x24xf32, #tpu.memory_space<vmem>>, %arg13: memref<8x32xf32, #tpu.memory_space<vmem>>, %arg14: memref<8x8xf32, #tpu.memory_space<vmem>>, %arg15: memref<8x8xf32, #tpu.memory_space<vmem>>, %arg16: memref<8x16xf32, #tpu.memory_space<vmem>>, %arg17: memref<8x16xf32, #tpu.memory_space<vmem>>, %arg18: memref<8x16xf32, #tpu.memory_space<vmem>>, %arg19: memref<8x16xf32, #tpu.memory_space<vmem>>) attributes {dimension_semantics = [#tpu.dimension_semantics<parallel>], iteration_bounds = array<i64: 2>, scalar_prefetch = 0 : i64, scratch_operands = 0 : i64, tpu.core_type = #tpu.core_type<tc>, window_params = [{transform_indices = @transform_0, window_bounds = array<i64: 8, 16>}, {transform_indices = @transform_1, window_bounds = array<i64: 8, 24>}, {transform_indices = @transform_2, window_bounds = array<i64: 8, 32>}, {transform_indices = @transform_3, window_bounds = array<i64: 8, 8>}, {transform_indices = @transform_4, window_bounds = array<i64: 8, 8>}, {transform_indices = @transform_5, window_bounds = array<i64: 8, 16>}, {transform_indices = @transform_6, window_bounds = array<i64: 8, 16>}, {transform_indices = @transform_7, window_bounds = array<i64: 8, 16>}, {transform_indices = @transform_8, window_bounds = array<i64: 8, 16>}, {pipeline_mode = #tpu.pipeline_mode<synchronous>, transform_indices = @transform_9, window_bounds = array<i64: 152, 256>}, {pipeline_mode = #tpu.pipeline_mode<synchronous>, transform_indices = @transform_10, window_bounds = array<i64: 1, 256>}, {transform_indices = @transform_11, window_bounds = array<i64: 8, 24>}, {transform_indices = @transform_12, window_bounds = array<i64: 8, 32>}, {transform_indices = @transform_13, window_bounds = array<i64: 8, 8>}, {transform_indices = @transform_14, window_bounds = array<i64: 8, 8>}, {transform_indices = @transform_15, window_bounds = array<i64: 8, 16>}, {transform_indices = @transform_16, window_bounds = array<i64: 8, 16>}, {transform_indices = @transform_17, window_bounds = array<i64: 8, 16>}, {transform_indices = @transform_18, window_bounds = array<i64: 8, 16>}]} {
    %cst = arith.constant 0.000000e+00 : f32
    %0 = vector.broadcast %cst : f32 to vector<8x256xf32>
    %c0 = arith.constant 0 : index
    %c0_0 = arith.constant 0 : index
    %1 = vector.load %arg1[%c0, %c0_0] : memref<8x16xf32, #tpu.memory_space<vmem>>, vector<8x16xf32>
    %c0_1 = arith.constant 0 : index
    %c0_2 = arith.constant 0 : index
    %2 = vector.load %arg10[%c0_1, %c0_2] : memref<152x256xf32, #tpu.memory_space<vmem>>, vector<16x256xf32>
    %cst_3 = arith.constant dense<0.000000e+00> : vector<8x256xf32>
    %3 = tpu.matmul %1, %2, %cst_3 {dimension_numbers = #tpu.dot_dimension_numbers<[1], [0], [0], [1], [0, 0, 1, 1], [], []>} : vector<8x16xf32>, vector<16x256xf32>, vector<8x256xf32> -> vector<8x256xf32>
    %4 = arith.addf %0, %3 : vector<8x256xf32>
    %c0_4 = arith.constant 0 : index
    %c0_5 = arith.constant 0 : index
    %5 = vector.load %arg2[%c0_4, %c0_5] : memref<8x24xf32, #tpu.memory_space<vmem>>, vector<8x24xf32>
    %c16 = arith.constant 16 : index
    %c0_6 = arith.constant 0 : index
    %6 = vector.load %arg10[%c16, %c0_6] : memref<152x256xf32, #tpu.memory_space<vmem>>, vector<24x256xf32>
    %cst_7 = arith.constant dense<0.000000e+00> : vector<8x256xf32>
    %7 = tpu.matmul %5, %6, %cst_7 {dimension_numbers = #tpu.dot_dimension_numbers<[1], [0], [0], [1], [0, 0, 1, 1], [], []>} : vector<8x24xf32>, vector<24x256xf32>, vector<8x256xf32> -> vector<8x256xf32>
    %8 = arith.addf %4, %7 : vector<8x256xf32>
    %c0_8 = arith.constant 0 : index
    %c0_9 = arith.constant 0 : index
    %9 = vector.load %arg3[%c0_8, %c0_9] : memref<8x32xf32, #tpu.memory_space<vmem>>, vector<8x32xf32>
    %c40 = arith.constant 40 : index
    %c0_10 = arith.constant 0 : index
    %10 = vector.load %arg10[%c40, %c0_10] : memref<152x256xf32, #tpu.memory_space<vmem>>, vector<32x256xf32>
    %cst_11 = arith.constant dense<0.000000e+00> : vector<8x256xf32>
    %11 = tpu.matmul %9, %10, %cst_11 {dimension_numbers = #tpu.dot_dimension_numbers<[1], [0], [0], [1], [0, 0, 1, 1], [], []>} : vector<8x32xf32>, vector<32x256xf32>, vector<8x256xf32> -> vector<8x256xf32>
    %12 = arith.addf %8, %11 : vector<8x256xf32>
    %c0_12 = arith.constant 0 : index
    %c0_13 = arith.constant 0 : index
    %13 = vector.load %arg4[%c0_12, %c0_13] : memref<8x8xf32, #tpu.memory_space<vmem>>, vector<8x8xf32>
    %c72 = arith.constant 72 : index
    %c0_14 = arith.constant 0 : index
    %14 = vector.load %arg10[%c72, %c0_14] : memref<152x256xf32, #tpu.memory_space<vmem>>, vector<8x256xf32>
    %cst_15 = arith.constant dense<0.000000e+00> : vector<8x256xf32>
    %15 = tpu.matmul %13, %14, %cst_15 {dimension_numbers = #tpu.dot_dimension_numbers<[1], [0], [0], [1], [0, 0, 1, 1], [], []>} : vector<8x8xf32>, vector<8x256xf32>, vector<8x256xf32> -> vector<8x256xf32>
    %16 = arith.addf %12, %15 : vector<8x256xf32>
    %c0_16 = arith.constant 0 : index
    %c0_17 = arith.constant 0 : index
    %17 = vector.load %arg5[%c0_16, %c0_17] : memref<8x8xf32, #tpu.memory_space<vmem>>, vector<8x8xf32>
    %c80 = arith.constant 80 : index
    %c0_18 = arith.constant 0 : index
    %18 = vector.load %arg10[%c80, %c0_18] : memref<152x256xf32, #tpu.memory_space<vmem>>, vector<8x256xf32>
    %cst_19 = arith.constant dense<0.000000e+00> : vector<8x256xf32>
    %19 = tpu.matmul %17, %18, %cst_19 {dimension_numbers = #tpu.dot_dimension_numbers<[1], [0], [0], [1], [0, 0, 1, 1], [], []>} : vector<8x8xf32>, vector<8x256xf32>, vector<8x256xf32> -> vector<8x256xf32>
    %20 = arith.addf %16, %19 : vector<8x256xf32>
    %c0_20 = arith.constant 0 : index
    %c0_21 = arith.constant 0 : index
    %21 = vector.load %arg6[%c0_20, %c0_21] : memref<8x16xf32, #tpu.memory_space<vmem>>, vector<8x16xf32>
    %c88 = arith.constant 88 : index
    %c0_22 = arith.constant 0 : index
    %22 = vector.load %arg10[%c88, %c0_22] : memref<152x256xf32, #tpu.memory_space<vmem>>, vector<16x256xf32>
    %cst_23 = arith.constant dense<0.000000e+00> : vector<8x256xf32>
    %23 = tpu.matmul %21, %22, %cst_23 {dimension_numbers = #tpu.dot_dimension_numbers<[1], [0], [0], [1], [0, 0, 1, 1], [], []>} : vector<8x16xf32>, vector<16x256xf32>, vector<8x256xf32> -> vector<8x256xf32>
    %24 = arith.addf %20, %23 : vector<8x256xf32>
    %c0_24 = arith.constant 0 : index
    %c0_25 = arith.constant 0 : index
    %25 = vector.load %arg7[%c0_24, %c0_25] : memref<8x16xf32, #tpu.memory_space<vmem>>, vector<8x16xf32>
    %c104 = arith.constant 104 : index
    %c0_26 = arith.constant 0 : index
    %26 = vector.load %arg10[%c104, %c0_26] : memref<152x256xf32, #tpu.memory_space<vmem>>, vector<16x256xf32>
    %cst_27 = arith.constant dense<0.000000e+00> : vector<8x256xf32>
    %27 = tpu.matmul %25, %26, %cst_27 {dimension_numbers = #tpu.dot_dimension_numbers<[1], [0], [0], [1], [0, 0, 1, 1], [], []>} : vector<8x16xf32>, vector<16x256xf32>, vector<8x256xf32> -> vector<8x256xf32>
    %28 = arith.addf %24, %27 : vector<8x256xf32>
    %c0_28 = arith.constant 0 : index
    %c0_29 = arith.constant 0 : index
    %29 = vector.load %arg8[%c0_28, %c0_29] : memref<8x16xf32, #tpu.memory_space<vmem>>, vector<8x16xf32>
    %c120 = arith.constant 120 : index
    %c0_30 = arith.constant 0 : index
    %30 = vector.load %arg10[%c120, %c0_30] : memref<152x256xf32, #tpu.memory_space<vmem>>, vector<16x256xf32>
    %cst_31 = arith.constant dense<0.000000e+00> : vector<8x256xf32>
    %31 = tpu.matmul %29, %30, %cst_31 {dimension_numbers = #tpu.dot_dimension_numbers<[1], [0], [0], [1], [0, 0, 1, 1], [], []>} : vector<8x16xf32>, vector<16x256xf32>, vector<8x256xf32> -> vector<8x256xf32>
    %32 = arith.addf %28, %31 : vector<8x256xf32>
    %c0_32 = arith.constant 0 : index
    %c0_33 = arith.constant 0 : index
    %33 = vector.load %arg9[%c0_32, %c0_33] : memref<8x16xf32, #tpu.memory_space<vmem>>, vector<8x16xf32>
    %c136 = arith.constant 136 : index
    %c0_34 = arith.constant 0 : index
    %34 = vector.load %arg10[%c136, %c0_34] : memref<152x256xf32, #tpu.memory_space<vmem>>, vector<16x256xf32>
    %cst_35 = arith.constant dense<0.000000e+00> : vector<8x256xf32>
    %35 = tpu.matmul %33, %34, %cst_35 {dimension_numbers = #tpu.dot_dimension_numbers<[1], [0], [0], [1], [0, 0, 1, 1], [], []>} : vector<8x16xf32>, vector<16x256xf32>, vector<8x256xf32> -> vector<8x256xf32>
    %36 = arith.addf %32, %35 : vector<8x256xf32>
    %c0_36 = arith.constant 0 : index
    %c0_37 = arith.constant 0 : index
    %37 = vector.load %arg11[%c0_36, %c0_37] : memref<1x256xf32, #tpu.memory_space<vmem>>, vector<1x256xf32>
    %38 = vector.broadcast %37 : vector<1x256xf32> to vector<8x256xf32>
    %39 = arith.addf %36, %38 : vector<8x256xf32>
    %40 = arith.negf %39 : vector<8x256xf32>
    %41 = math.exp %40 : vector<8x256xf32>
    %cst_38 = arith.constant 1.000000e+00 : f32
    %42 = vector.broadcast %cst_38 : f32 to vector<8x256xf32>
    %43 = arith.addf %42, %41 : vector<8x256xf32>
    %44 = arith.divf %42, %43 : vector<8x256xf32>
    %45 = vector.extract_strided_slice %44 {offsets = [0, 0], sizes = [8, 24], strides = [1, 1]} : vector<8x256xf32> to vector<8x24xf32>
    %c0_39 = arith.constant 0 : index
    %c0_40 = arith.constant 0 : index
    %46 = vector.load %arg2[%c0_39, %c0_40] : memref<8x24xf32, #tpu.memory_space<vmem>>, vector<8x24xf32>
    %47 = arith.subf %45, %46 : vector<8x24xf32>
    %c0_41 = arith.constant 0 : index
    %c0_42 = arith.constant 0 : index
    %48 = vector.load %arg12[%c0_41, %c0_42] : memref<8x24xf32, #tpu.memory_space<vmem>>, vector<8x24xf32>
    tpu.vector_store %arg12[%c0_41, %c0_42], %47 {strides = array<i32>} : memref<8x24xf32, #tpu.memory_space<vmem>>, vector<8x24xf32>,
    %49 = vector.extract_strided_slice %44 {offsets = [0, 24], sizes = [8, 32], strides = [1, 1]} : vector<8x256xf32> to vector<8x32xf32>
    %c0_43 = arith.constant 0 : index
    %c0_44 = arith.constant 0 : index
    %50 = vector.load %arg3[%c0_43, %c0_44] : memref<8x32xf32, #tpu.memory_space<vmem>>, vector<8x32xf32>
    %51 = arith.subf %49, %50 : vector<8x32xf32>
    %c0_45 = arith.constant 0 : index
    %c0_46 = arith.constant 0 : index
    %52 = vector.load %arg13[%c0_45, %c0_46] : memref<8x32xf32, #tpu.memory_space<vmem>>, vector<8x32xf32>
    tpu.vector_store %arg13[%c0_45, %c0_46], %51 {strides = array<i32>} : memref<8x32xf32, #tpu.memory_space<vmem>>, vector<8x32xf32>,
    %53 = vector.extract_strided_slice %44 {offsets = [0, 56], sizes = [8, 8], strides = [1, 1]} : vector<8x256xf32> to vector<8x8xf32>
    %c0_47 = arith.constant 0 : index
    %c0_48 = arith.constant 0 : index
    %54 = vector.load %arg4[%c0_47, %c0_48] : memref<8x8xf32, #tpu.memory_space<vmem>>, vector<8x8xf32>
    %55 = arith.subf %53, %54 : vector<8x8xf32>
    %c0_49 = arith.constant 0 : index
    %c0_50 = arith.constant 0 : index
    %56 = vector.load %arg14[%c0_49, %c0_50] : memref<8x8xf32, #tpu.memory_space<vmem>>, vector<8x8xf32>
    tpu.vector_store %arg14[%c0_49, %c0_50], %55 {strides = array<i32>} : memref<8x8xf32, #tpu.memory_space<vmem>>, vector<8x8xf32>,
    %57 = vector.extract_strided_slice %44 {offsets = [0, 64], sizes = [8, 8], strides = [1, 1]} : vector<8x256xf32> to vector<8x8xf32>
    %c0_51 = arith.constant 0 : index
    %c0_52 = arith.constant 0 : index
    %58 = vector.load %arg5[%c0_51, %c0_52] : memref<8x8xf32, #tpu.memory_space<vmem>>, vector<8x8xf32>
    %59 = arith.subf %57, %58 : vector<8x8xf32>
    %c0_53 = arith.constant 0 : index
    %c0_54 = arith.constant 0 : index
    %60 = vector.load %arg15[%c0_53, %c0_54] : memref<8x8xf32, #tpu.memory_space<vmem>>, vector<8x8xf32>
    tpu.vector_store %arg15[%c0_53, %c0_54], %59 {strides = array<i32>} : memref<8x8xf32, #tpu.memory_space<vmem>>, vector<8x8xf32>,
    %61 = vector.extract_strided_slice %44 {offsets = [0, 72], sizes = [8, 16], strides = [1, 1]} : vector<8x256xf32> to vector<8x16xf32>
    %c0_55 = arith.constant 0 : index
    %c0_56 = arith.constant 0 : index
    %62 = vector.load %arg6[%c0_55, %c0_56] : memref<8x16xf32, #tpu.memory_space<vmem>>, vector<8x16xf32>
    %63 = arith.subf %61, %62 : vector<8x16xf32>
    %c0_57 = arith.constant 0 : index
    %c0_58 = arith.constant 0 : index
    %64 = vector.load %arg16[%c0_57, %c0_58] : memref<8x16xf32, #tpu.memory_space<vmem>>, vector<8x16xf32>
    tpu.vector_store %arg16[%c0_57, %c0_58], %63 {strides = array<i32>} : memref<8x16xf32, #tpu.memory_space<vmem>>, vector<8x16xf32>,
    %65 = vector.extract_strided_slice %44 {offsets = [0, 88], sizes = [8, 16], strides = [1, 1]} : vector<8x256xf32> to vector<8x16xf32>
    %c0_59 = arith.constant 0 : index
    %c0_60 = arith.constant 0 : index
    %66 = vector.load %arg7[%c0_59, %c0_60] : memref<8x16xf32, #tpu.memory_space<vmem>>, vector<8x16xf32>
    %67 = arith.subf %65, %66 : vector<8x16xf32>
    %c0_61 = arith.constant 0 : index
    %c0_62 = arith.constant 0 : index
    %68 = vector.load %arg17[%c0_61, %c0_62] : memref<8x16xf32, #tpu.memory_space<vmem>>, vector<8x16xf32>
    tpu.vector_store %arg17[%c0_61, %c0_62], %67 {strides = array<i32>} : memref<8x16xf32, #tpu.memory_space<vmem>>, vector<8x16xf32>,
    %69 = vector.extract_strided_slice %44 {offsets = [0, 104], sizes = [8, 16], strides = [1, 1]} : vector<8x256xf32> to vector<8x16xf32>
    %c0_63 = arith.constant 0 : index
    %c0_64 = arith.constant 0 : index
    %70 = vector.load %arg8[%c0_63, %c0_64] : memref<8x16xf32, #tpu.memory_space<vmem>>, vector<8x16xf32>
    %71 = arith.subf %69, %70 : vector<8x16xf32>
    %c0_65 = arith.constant 0 : index
    %c0_66 = arith.constant 0 : index
    %72 = vector.load %arg18[%c0_65, %c0_66] : memref<8x16xf32, #tpu.memory_space<vmem>>, vector<8x16xf32>
    tpu.vector_store %arg18[%c0_65, %c0_66], %71 {strides = array<i32>} : memref<8x16xf32, #tpu.memory_space<vmem>>, vector<8x16xf32>,
    %73 = vector.extract_strided_slice %44 {offsets = [0, 120], sizes = [8, 16], strides = [1, 1]} : vector<8x256xf32> to vector<8x16xf32>
    %c0_67 = arith.constant 0 : index
    %c0_68 = arith.constant 0 : index
    %74 = vector.load %arg9[%c0_67, %c0_68] : memref<8x16xf32, #tpu.memory_space<vmem>>, vector<8x16xf32>
    %75 = arith.subf %73, %74 : vector<8x16xf32>
    %c0_69 = arith.constant 0 : index
    %c0_70 = arith.constant 0 : index
    %76 = vector.load %arg19[%c0_69, %c0_70] : memref<8x16xf32, #tpu.memory_space<vmem>>, vector<8x16xf32>
    tpu.vector_store %arg19[%c0_69, %c0_70], %75 {strides = array<i32>} : memref<8x16xf32, #tpu.memory_space<vmem>>, vector<8x16xf32>,
    return
  }
  func.func @transform_0(%arg0: i32) -> (i32, i32) {
    %c0_i32 = arith.constant 0 : i32
    %c0_i32_0 = arith.constant 0 : i32
    return %arg0, %c0_i32 : i32, i32
  }
  func.func @transform_1(%arg0: i32) -> (i32, i32) {
    %c0_i32 = arith.constant 0 : i32
    %c0_i32_0 = arith.constant 0 : i32
    return %arg0, %c0_i32 : i32, i32
  }
  func.func @transform_2(%arg0: i32) -> (i32, i32) {
    %c0_i32 = arith.constant 0 : i32
    %c0_i32_0 = arith.constant 0 : i32
    return %arg0, %c0_i32 : i32, i32
  }
  func.func @transform_3(%arg0: i32) -> (i32, i32) {
    %c0_i32 = arith.constant 0 : i32
    %c0_i32_0 = arith.constant 0 : i32
    return %arg0, %c0_i32 : i32, i32
  }
  func.func @transform_4(%arg0: i32) -> (i32, i32) {
    %c0_i32 = arith.constant 0 : i32
    %c0_i32_0 = arith.constant 0 : i32
    return %arg0, %c0_i32 : i32, i32
  }
  func.func @transform_5(%arg0: i32) -> (i32, i32) {
    %c0_i32 = arith.constant 0 : i32
    %c0_i32_0 = arith.constant 0 : i32
    return %arg0, %c0_i32 : i32, i32
  }
  func.func @transform_6(%arg0: i32) -> (i32, i32) {
    %c0_i32 = arith.constant 0 : i32
    %c0_i32_0 = arith.constant 0 : i32
    return %arg0, %c0_i32 : i32, i32
  }
  func.func @transform_7(%arg0: i32) -> (i32, i32) {
    %c0_i32 = arith.constant 0 : i32
    %c0_i32_0 = arith.constant 0 : i32
    return %arg0, %c0_i32 : i32, i32
  }
  func.func @transform_8(%arg0: i32) -> (i32, i32) {
    %c0_i32 = arith.constant 0 : i32
    %c0_i32_0 = arith.constant 0 : i32
    return %arg0, %c0_i32 : i32, i32
  }
  func.func @transform_9(%arg0: i32) -> (i32, i32) {
    %c0_i32 = arith.constant 0 : i32
    %c0_i32_0 = arith.constant 0 : i32
    %c0_i32_1 = arith.constant 0 : i32
    return %c0_i32, %c0_i32_0 : i32, i32
  }
  func.func @transform_10(%arg0: i32) -> (i32, i32) {
    %c0_i32 = arith.constant 0 : i32
    %c0_i32_0 = arith.constant 0 : i32
    %c0_i32_1 = arith.constant 0 : i32
    return %c0_i32, %c0_i32_0 : i32, i32
  }
  func.func @transform_11(%arg0: i32) -> (i32, i32) {
    %c0_i32 = arith.constant 0 : i32
    %c0_i32_0 = arith.constant 0 : i32
    return %arg0, %c0_i32 : i32, i32
  }
  func.func @transform_12(%arg0: i32) -> (i32, i32) {
    %c0_i32 = arith.constant 0 : i32
    %c0_i32_0 = arith.constant 0 : i32
    return %arg0, %c0_i32 : i32, i32
  }
  func.func @transform_13(%arg0: i32) -> (i32, i32) {
    %c0_i32 = arith.constant 0 : i32
    %c0_i32_0 = arith.constant 0 : i32
    return %arg0, %c0_i32 : i32, i32
  }
  func.func @transform_14(%arg0: i32) -> (i32, i32) {
    %c0_i32 = arith.constant 0 : i32
    %c0_i32_0 = arith.constant 0 : i32
    return %arg0, %c0_i32 : i32, i32
  }
  func.func @transform_15(%arg0: i32) -> (i32, i32) {
    %c0_i32 = arith.constant 0 : i32
    %c0_i32_0 = arith.constant 0 : i32
    return %arg0, %c0_i32 : i32, i32
  }
  func.func @transform_16(%arg0: i32) -> (i32, i32) {
    %c0_i32 = arith.constant 0 : i32
    %c0_i32_0 = arith.constant 0 : i32
    return %arg0, %c0_i32 : i32, i32
  }
  func.func @transform_17(%arg0: i32) -> (i32, i32) {
    %c0_i32 = arith.constant 0 : i32
    %c0_i32_0 = arith.constant 0 : i32
    return %arg0, %c0_i32 : i32, i32
  }
  func.func @transform_18(%arg0: i32) -> (i32, i32) {
    %c0_i32 = arith.constant 0 : i32
    %c0_i32_0 = arith.constant 0 : i32
    return %arg0, %c0_i32 : i32, i32
  }
}

</mosaic_0001>

<bundles_post_ra>
// kernel: tpu_custom_call.1
= control target key start
LH: loop header
LB: loop body
LE: loop exit
PB: predicated region body
PF: predicated region fallthrough
CT: control target
= control target key end

     0   :  { %s3448_s0 = inlined_call_operand.vmem [shape: f32[16,16], index: 0, kind: input, shape index: {}]   ;;  %s3449_s1 = inlined_call_operand.vmem [shape: f32[16,24], index: 1, kind: input, shape index: {}]   ;;  %s3450_s2 = inlined_call_operand.vmem [shape: f32[16,32], index: 2, kind: input, shape index: {}]   ;;  %s3451_s3 = inlined_call_operand.vmem [shape: f32[16,8], index: 3, kind: input, shape index: {}]   ;;  %s3452_s4 = inlined_call_operand.vmem [shape: f32[16,8], index: 4, kind: input, shape index: {}]   ;;  %s3453_s5 = inlined_call_operand.vmem [shape: f32[16,16], index: 5, kind: input, shape index: {}]   ;;  %s3454_s6 = inlined_call_operand.hbm [shape: f32[16,16], index: 6, kind: input, shape index: {}]   ;;  %s3455_s7 = inlined_call_operand.hbm [shape: f32[16,16], index: 7, kind: input, shape index: {}]   ;;  %s3456_s8 = inlined_call_operand.hbm [shape: f32[16,16], index: 8, kind: input, shape index: {}]   ;;  %s3457_s9 = inlined_call_operand.hbm [shape: f32[152,256], index: 9, kind: input, shape index: {}]   ;;  %s3458_s10 = inlined_call_operand.vmem [shape: f32[1,256], index: 10, kind: input, shape index: {}]   ;;  %s3459_s11 = inlined_call_operand.hbm [shape: f32[16,24], index: 11, kind: output, shape index: {0}]   ;;  %s3460_s12 = inlined_call_operand.hbm [shape: f32[16,32], index: 12, kind: output, shape index: {1}]   ;;  %s3461_s13 = inlined_call_operand.vmem [shape: f32[16,8], index: 13, kind: output, shape index: {2}]   ;;  %s3462_s14 = inlined_call_operand.vmem [shape: f32[16,8], index: 14, kind: output, shape index: {3}]   ;;  %s3463_s15 = inlined_call_operand.hbm [shape: f32[16,16], index: 15, kind: output, shape index: {4}]   ;;  %s3464_s16 = inlined_call_operand.hbm [shape: f32[16,16], index: 16, kind: output, shape index: {5}]   ;;  %s3465_s17 = inlined_call_operand.hbm [shape: f32[16,16], index: 17, kind: output, shape index: {6}]   ;;  %s3466_s18 = inlined_call_operand.hbm [shape: f32[16,16], index: 18, kind: output, shape index: {7}]  }
   0x1   :  { %3499 = sst [smem:[#allocation32_spill]] %s3448_s0 }
   0x2   :  { %3500 = sst [smem:[#allocation33_spill]] %s3449_s1 }
   0x3   :  { %3501 = sst [smem:[#allocation34_spill]] %s3450_s2 }
   0x4   :  { %3502 = sst [smem:[#allocation35_spill]] %s3451_s3 }
   0x5   :  { %3503 = sst [smem:[#allocation36_spill]] %s3452_s4 }
   0x6   :  { %3504 = sst [smem:[#allocation37_spill]] %s3453_s5 }
   0x7   :  { %3505 = sst [smem:[#allocation38_spill]] %s3454_s6 }
   0x8   :  { %3506 = sst [smem:[#allocation39_spill]] %s3455_s7 }
   0x9   :  { %3507 = sst [smem:[#allocation40_spill]] %s3458_s10 }
   0xa   :  { %3508 = sst [smem:[#allocation41_spill]] %s3459_s11 }
   0xb   :  { %3509 = sst [smem:[#allocation42_spill]] %s3460_s12 }
   0xc   :  { %3510 = sst [smem:[#allocation43_spill]] %s3461_s13 }
   0xd   :  { %3511 = sst [smem:[#allocation44_spill]] %s3462_s14 }
   0xe   :  { %3512 = sst [smem:[#allocation45_spill]] %s3463_s15 }
   0xf   :  { %3513 = sst [smem:[#allocation46_spill]] %s3464_s16 }
  0x10   :  { %3514 = sst [smem:[#allocation47_spill]] %s3465_s17 }
  0x11   :  { %3515 = sst [smem:[#allocation48_spill]] %s3466_s18 }
  0x12   :  { %24 = vsyncpa [#allocation3], 0 }
  0x13   :  { %26 = vsyncpa [#allocation3 + $0x1], 0 }
  0x14   :  { %27 = vsyncpa [#allocation6], 0 }
  0x15   :  { %29 = vsyncpa [#allocation6 + $0x1], 0 }
  0x16   :  { %30 = vsyncpa [#allocation9], 0 }
  0x17   :  { %31 = vsyncpa [#allocation4], 0 }
  0x18   :  { %33 = vsyncpa [#allocation4 + $0x1], 0 }
  0x19   :  { %34 = vsyncpa [#allocation12], 0 }
  0x1a   :  { %36 = vsyncpa [#allocation12 + $0x1], 0 }
  0x1b   :  { %37 = vsyncpa [#allocation15], 0 }
  0x1c   :  { %39 = vsyncpa [#allocation15 + $0x1], 0 }
  0x1d   :  { %40 = vsyncpa [#allocation18], 0 }
  0x1e   :  { %42 = vsyncpa [#allocation18 + $0x1], 0  ;;  %s2877_s27 = smov 0   ;;  %s2879_s28 = smov 0  }
  0x1f   :  { %s2881_s29 = smov 0   ;;  %s2883_s30 = smov 0  }
  0x20 LB: > { %3516 = sst [smem:[#allocation26_spill]] %s2746_s27  ;;  %s2898_s0 = sadd.s32 1, %s2758_s30   ;;  %s2758_s30 = sphi %s2883_s30, %s3567_s30   ;;  %s2754_s29 = sphi %s2881_s29, %s3571_s29   ;;  %s2750_s28 = sphi %s2879_s28, %s3570_s28   ;;  %s2746_s27 = sphi %s2877_s27, %s3569_s27  }
  0x21   : > { %3517 = sst [smem:[#allocation27_spill]] %s2758_s30  ;;  %s211_s19 = sadd.s32 1, %s2754_s29 }
  0x22   : > { %3518 = sst [smem:[#allocation28_spill]] %s2898_s0  ;;  %s208_s1 = ssub.s32 %s2758_s30, %s2898_s0 }
  0x23   : > { %p3473_p0 = scmp.ne.s32.totalorder %s2754_s29, %s2750_s28  ;;  %p209_p1 = scmp.eq.s32.totalorder %s208_s1, 0 }
  0x24   : > { %p219_p2 = scmp.eq.s32.totalorder %s2758_s30, 0  ;;  %p2358_p4 = scmp.lt.s32.totalorder %s2758_s30, 2 }
  0x25   : > { %s2909_s20 = scalar_select %p209_p1, %s2754_s29, %s211_s19  }
  0x26   : > { %p220_p5 = por %p219_p2, %p3473_p0  ;;  %s3467_s21 = sand.u32 1, %s2754_s29  }
  0x27   : > { %3519 = sst [smem:[#allocation29_spill]] %s2909_s20  ;;  %s2917_s22 = sshll.u32 %s3467_s21, 3 }
  0x28   : > { %s2920_s2 = sshll.u32 %s2758_s30, 7  ;;  %p2922_p6 = pnand %p2358_p4, %p220_p5 }
  0x29   : > { %s626_s24 = sand.u32 1, %s2758_s30   ;;  %s3521_s7 = sld [smem:[#allocation39_spill]] }
  0x2a   : > { %s3520_s23 = scalar_select %p2922_p6, 1, 0 }
  0x2b   : > { %s630_s1 = scalar_lea.vmem [#allocation5], %s2917_s22  ;;  %s2936_s20 = scalar_lea.sflag [#allocation6], %s626_s24 }
  0x2c   : > { %s637_s21 = sshll.u32 %s630_s1, 4  ;;  %p2942_p8 = pneg %p2922_p6  ;;  %s2934_s21 = int_to_ptr.vmem [resolvable:$true] %s637_s21 }
  0x2e   : > { %s3522_s14 = scalar_select %p2942_p8, 1, 0 }
  0x2f   : > { %s2931_s19 = scalar_lea.hbm %s3521_s7, %s2920_s2  ;;  %s2419_s13 = scalar_lea.hbm %s3521_s7, 256 }
  0x30   : > { %s2414_s0 = scalar_lea.hbm %s2931_s19, 128  ;;  %p2420_p11 = scmp.lt.u32.totalorder %s2931_s19, %s3521_s7 }
  0x31   : > { %p2415_p7 = scmp.ne.s32.totalorder %s2931_s19, %s2414_s0  ;;  %p2421_p12 = scmp.lt.u32.totalorder %s2419_s13, %s2414_s0 }
  0x32   : > { %p2423_p1 = scmp.lt.u32.totalorder %s2414_s0, %s2931_s19 }
  0x33   : > { %p2417_p9 = pnand %p2942_p8, %p2415_p7  ;;  %p2422_p13 = por %p2421_p12, %p2420_p11 }
  0x35   : > { %p2418_p10 = pneg %p2417_p9  ;;  %p2424_p2 = por %p2423_p1, %p2422_p13 }
  0x37   : > { %p2425_p4 = pnand %p2424_p2, %p2418_p10 }
  0x39   : > { %2428 = shalt.err (!%p2425_p4)
}
  0x3a   : > { %s2429_s24 = scalar_lea.vmem %s2934_s21, 128  ;;  %s2760_s25 = smov [#allocation5]  }
  0x3b   : > { %p2430_p5 = scmp.ne.s32.totalorder %s2934_s21, %s2429_s24  ;;  %s2434_s26 = sshll.u32 %s2760_s25, 4  ;;  %s2435_s26 = int_to_ptr.vmem [resolvable:$false] %s2434_s26 }
  0x3c   : > { %s2436_s18 = scalar_lea.vmem %s2435_s26, 256  ;;  %p2437_p3 = scmp.lt.s32.totalorder %s2934_s21, %s2435_s26 }
  0x3d   : > { %p2432_p7 = pnand %p2430_p5, %p2942_p8  ;;  %p2438_p0 = scmp.lt.s32.totalorder %s2436_s18, %s2429_s24 }
  0x3f   : > { %p2433_p9 = pneg %p2432_p7  ;;  %p2439_p11 = por %p2438_p0, %p2437_p3 }
  0x41   : > { %p2440_p12 = pnand %p2439_p11, %p2433_p9 }
  0x43   : > { %2443 = shalt.err (!%p2440_p12)
}
  0x44   : > { %2334 = dma.hbm_to_vmem [thread:$0]  (!%p2922_p6), %s2931_s19, 128, %s2934_s21, %s2936_s20  }
  0x45   : > { %s2967_s13 = sadd.s32 4294967295, %s2758_s30   ;;  %s3474_s0 = sadd.s32 4294967294, %s2758_s30  }
  0x46   : > { %p224_p0 = scmp.ne.s32.totalorder %s2750_s28, %s2746_s27  ;;  %p3486_p3 = scmp.eq.s32.totalorder %s2967_s13, 0 }
  0x47   : > { %p342_p10 = scmp.eq.s32.totalorder %s2967_s13, 1  ;;  %p348_p13 = scmp.eq.s32.totalorder %s3474_s0, 1 }
  0x48   : > { %p2978_p1 = por %p3486_p3, %p224_p0  ;;  %p2201_p2 = scmp.ge.s32.totalorder %s2758_s30, 1 }
  0x49   : > { %p3524_p4 = scmp.ne.s32.totalorder %s2754_s29, %s2750_s28  ;;  %p2990_p7 = por %p348_p13, %p224_p0 }
  0x4a   : > { %s3523_s1 = scalar_select %p2978_p1, 1, 0 }
  0x4b   : > { %p2986_p5 = por %p342_p10, %p3524_p4  ;;  %p537_p9 = scmp.lt.s32.totalorder %s2758_s30, 3 }
  0x4c   : > { %s3527_s19 = scalar_select %p2990_p7, 1, 0 }
  0x4d   : > { %s3525_s21 = scalar_select %p2986_p5, 1, 0 }
  0x4e   : > { %3528 = sst [smem:[#allocation31_spill]] %s3527_s19  ;;  %p2995_p11 = pnand %p2201_p2, %p537_p9 }
  0x4f   : > { %3526 = sst [smem:[#allocation30_spill]] %s3525_s21  ;;  %s2761_s25 = smov [#allocation8]  }
  0x50   : > { %s3529_s24 = scalar_select %p2995_p11, 1, 0 }
  0x51   : > { %s549_s26 = sshll.u32 %s2761_s25, 4  ;;  %p2324_p12 = pneg %p2995_p11  ;;  %s2999_s26 = int_to_ptr.vmem [resolvable:$true] %s549_s26 }
  0x52   : > { %s3530_s6 = sld [smem:[#allocation38_spill]]  ;;  %s612_s30 = scalar_lea.vmem [#allocation2], %s2917_s22 }
  0x53   : > { %p3011_p0 = pnand %p2324_p12, %p3486_p3  ;;  %s619_s27 = sshll.u32 %s612_s30, 4  ;;  %s3016_s27 = int_to_ptr.vmem [resolvable:$true] %s619_s27 }
  0x54   : > { %s3022_s17 = scalar_lea.hbm %s3456_s8, %s2920_s2  ;;  %s2444_s0 = scalar_lea.hbm %s3457_s9, 4864 }
  0x55   : > { %p2445_p10 = scmp.ne.s32.totalorder %s3457_s9, %s2444_s0  ;;  %p2446_p13 = pneg %p3011_p0 }
  0x56   : > { %p2451_p9 = scmp.lt.u32.totalorder %s2444_s0, %s3457_s9 }
  0x57   : > { %p2447_p2 = pnand %p2446_p13, %p2445_p10 }
  0x58   : > { %s3007_s7 = scalar_lea.hbm %s3530_s6, %s2920_s2 }
  0x59   : > { %p2448_p4 = pneg %p2447_p2 }
  0x5b   : > { %p2453_p12 = pnand %p2451_p9, %p2448_p4 }
  0x5d   : > { %2456 = shalt.err (!%p2453_p12)
}
  0x5e   : > { %s2457_s15 = scalar_lea.vmem %s2999_s26, 4864  ;;  %p2465_p1 = scmp.lt.s32.totalorder %s2999_s26, %s2999_s26 }
  0x5f   : > { %p2458_p3 = scmp.ne.s32.totalorder %s2999_s26, %s2457_s15  ;;  %p2466_p11 = scmp.lt.s32.totalorder %s2457_s15, %s2457_s15 }
  0x61   : > { %p2460_p7 = pnand %p2458_p3, %p2446_p13  ;;  %p2467_p6 = por %p2466_p11, %p2465_p1 }
  0x63   : > { %p2461_p5 = pneg %p2460_p7 }
  0x65   : > { %p2468_p8 = pnand %p2467_p6, %p2461_p5 }
  0x67   : > { %2471 = shalt.err (!%p2468_p8)
}
  0x68   : > { %s2762_s11 = smov 256   ;;  %s2763_s12 = smov 16  }
  0x69   : > { %2327 = dma.hbm_to_vmem [thread:$0]  (!%p3011_p0), %s3457_s9, 4864, %s2999_s26, [#allocation9], %s2762_s11, %s2762_s11, %s2763_s12  }
  0x6a   : > { %s3532_s21 = sand.u32 1, %s2754_s29   ;;  %s2472_s0 = scalar_lea.hbm %s3007_s7, 128 }
  0x6b   : > { %s609_s25 = scalar_lea.sflag [#allocation3], %s3532_s21  ;;  %p2473_p6 = scmp.ne.s32.totalorder %s3007_s7, %s2472_s0 }
  0x6c   : > { %p3533_p8 = scmp.ne.s32.totalorder %s3522_s14, 0  ;;  %s2477_s15 = scalar_lea.hbm %s3530_s6, 256 }
  0x6d   : > { %p2478_p5 = scmp.lt.u32.totalorder %s3007_s7, %s3530_s6  ;;  %p2479_p7 = scmp.lt.u32.totalorder %s2477_s15, %s2472_s0 }
  0x6e   : > { %p2475_p3 = pnand %p2473_p6, %p3533_p8  ;;  %p2481_p10 = scmp.lt.u32.totalorder %s2472_s0, %s3007_s7 }
  0x6f   : > { %p2480_p11 = por %p2479_p7, %p2478_p5 }
  0x70   : > { %p2476_p1 = pneg %p2475_p3 }
  0x71   : > { %p2482_p13 = por %p2481_p10, %p2480_p11 }
  0x73   : > { %p2483_p0 = pnand %p2482_p13, %p2476_p1 }
  0x75   : > { %2486 = shalt.err (!%p2483_p0)
}
  0x76   : > { %s2487_s19 = scalar_lea.vmem %s3016_s27, 128  ;;  %s2764_s26 = smov [#allocation2]  }
  0x77   : > { %p2488_p2 = scmp.ne.s32.totalorder %s3016_s27, %s2487_s19  ;;  %s2492_s11 = sshll.u32 %s2764_s26, 4  ;;  %s2493_s11 = int_to_ptr.vmem [resolvable:$false] %s2492_s11 }
  0x78   : > { %s2494_s5 = scalar_lea.vmem %s2493_s11, 256  ;;  %p2495_p12 = scmp.lt.s32.totalorder %s3016_s27, %s2493_s11 }
  0x79   : > { %p2490_p4 = pnand %p2488_p2, %p3533_p8  ;;  %p2496_p6 = scmp.lt.s32.totalorder %s2494_s5, %s2487_s19 }
  0x7b   : > { %p2491_p9 = pneg %p2490_p4  ;;  %p2497_p3 = por %p2496_p6, %p2495_p12 }
  0x7d   : > { %p2498_p5 = pnand %p2497_p3, %p2491_p9 }
  0x7f   : > { %2501 = shalt.err (!%p2498_p5)
}
  0x80   : > { %p3534_p1 = scmp.ne.s32.totalorder %s3520_s23, 0  ;;  %s648_s10 = scalar_lea.vmem [#allocation7], %s2917_s22 }
  0x81   : > { %s655_s12 = sshll.u32 %s648_s10, 4  ;;  %s2502_s16 = scalar_lea.hbm %s3022_s17, 128  ;;  %s656_s12 = int_to_ptr.vmem [resolvable:$true] %s655_s12 }
  0x82   : > { %2331 = dma.hbm_to_vmem [thread:$0]  (!%p3534_p1), %s3007_s7, 128, %s3016_s27, %s609_s25  }
  0x83   : > { %p2503_p7 = scmp.ne.s32.totalorder %s3022_s17, %s2502_s16  ;;  %s2507_s0 = scalar_lea.hbm %s3456_s8, 256 }
  0x84   : > { %p2508_p13 = scmp.lt.u32.totalorder %s3022_s17, %s3456_s8  ;;  %p2509_p0 = scmp.lt.u32.totalorder %s2507_s0, %s2502_s16 }
  0x85   : > { %p2505_p11 = pnand %p2503_p7, %p3533_p8  ;;  %p2511_p4 = scmp.lt.u32.totalorder %s2502_s16, %s3022_s17 }
  0x86   : > { %p2510_p2 = por %p2509_p0, %p2508_p13 }
  0x87   : > { %p2506_p10 = pneg %p2505_p11 }
  0x88   : > { %p2512_p9 = por %p2511_p4, %p2510_p2 }
  0x8a   : > { %p2513_p12 = pnand %p2512_p9, %p2506_p10 }
  0x8c   : > { %2516 = shalt.err (!%p2513_p12)
}
  0x8d   : > { %s2517_s7 = scalar_lea.vmem %s656_s12, 128  ;;  %s2765_s27 = smov [#allocation7]  }
  0x8e   : > { %p2518_p6 = scmp.ne.s32.totalorder %s656_s12, %s2517_s7  ;;  %s2522_s22 = sshll.u32 %s2765_s27, 4  ;;  %s2523_s22 = int_to_ptr.vmem [resolvable:$false] %s2522_s22 }
  0x8f   : > { %s2524_s25 = scalar_lea.vmem %s2523_s22, 256  ;;  %p2525_p7 = scmp.lt.s32.totalorder %s656_s12, %s2523_s22 }
  0x90   : > { %p2520_p3 = pnand %p2518_p6, %p3533_p8  ;;  %p2526_p11 = scmp.lt.s32.totalorder %s2524_s25, %s2517_s7 }
  0x92   : > { %p2521_p5 = pneg %p2520_p3  ;;  %p2527_p1 = por %p2526_p11, %p2525_p7 }
  0x94   : > { %p2528_p0 = pnand %p2527_p1, %p2521_p5 }
  0x96   : > { %2531 = shalt.err (!%p2528_p0)
}
  0x97   : > { %p3535_p13 = scmp.ne.s32.totalorder %s3520_s23, 0  ;;  %p3536_p10 = scmp.ne.s32.totalorder %s3529_s24, 0 }
  0x98   : > { %s3090_s14 = sand.u32 (!%p3536_p10), 1, %s2750_s28   ;;  %p3537_p8 = scmp.ne.s32.totalorder (!%p3536_p10), %s3523_s1, 0 }
  0x99   : > { %2337 = dma.hbm_to_vmem [thread:$0]  (!%p3535_p13), %s3022_s17, 128, %s656_s12, %s2936_s20  }
  0x9a   : > { %664 = sbr.rel (%p3536_p10) target bundleno = 694 (0x2b6), region = 64  ;;  %s3093_s15 = sshll.u32 (!%p3536_p10), %s3090_s14, 3 }
  0x9b   : > { %s667_s19 = scalar_lea.sflag (!%p3536_p10), [#allocation3], %s3090_s14  ;;  %s670_s26 = scalar_lea.vmem (!%p3536_p10), [#allocation2], %s3093_s15 }
  0xa1   : > { %2717 = dma.done.wait (%p3537_p8), %s667_s19, 128  }
  0xa2   : > { %2719 = vsyncadd (%p3537_p8), %s667_s19, 4294967168  ;;  %s3102_s17 = sand.u32 1, %s2967_s13   ;;  %s679_s23 = scalar_lea.vmem [#allocation5], %s3093_s15 }
  0xa3   : > { %s676_s20 = scalar_lea.sflag [#allocation6], %s3102_s17 }
  0xa4   : > { %2721 = dma.done.wait (%p3537_p8), %s676_s20, 256  }
  0xa5   : > { %2723 = vsyncadd (%p3537_p8), %s676_s20, 4294967040  ;;  %s688_s24 = scalar_lea.vmem [#allocation7], %s3093_s15  ;;  %p3538_p1 = scmp.eq.s32.totalorder %s2967_s13, 0 }
  0xa7   : > { %2725 = dma.done.wait (%p3538_p1), [#allocation9], 4864   ;;  %p3539_p2 = pmov %p3538_p1 }
  0xa8   : > { %p812_p4 = scmp.lt.s32.totalorder %s2967_s13, 1  ;;  %v2766_v0 = vmov 0.0   ;;  %s3540_s3 = sld [smem:[#allocation35_spill]]  ;;  %v1094_v1 = vld [vmem:[#allocation8 + $0x98] sm:$0xff]  ;;  %v1093_v2 = vld [vmem:[#allocation8 + $0x90] sm:$0xff]  ;;  %vm1095_vm0 = vcmask 64512  }
  0xa9   : > { %2727 = vsyncadd (%p3539_p2), [#allocation9], 4294962432  ;;  %1163 = vmatprep.mubr.f32.mxu0 %v2766_v0  ;;  %924 = vmatprep.mubr.f32.mxu1 %v2766_v0  ;;  %v1174_v4 = vld [vmem:[#allocation8 + $0xa8] sm:$0xff]  ;;  %v1173_v5 = vld [vmem:[#allocation8 + $0xa0] sm:$0xff]  ;;  %s3541_s21 = sld [smem:[#allocation33_spill]]  ;;  %s3542_s4 = sld [smem:[#allocation36_spill]] }
  0xaa   : > { %s813_s11 = scalar_select %p812_p4, %s2967_s13, 1  ;;  %1099 = vmatprep.subr.mxu0 %v1094_v1  ;;  %v851_v6 = vld [vmem:[#allocation8 + $0x28] sm:$0xff]  ;;  %v853_v7 = vld [vmem:[#allocation8 + $0x38] sm:$0xff]  ;;  %v850_v8 = vld [vmem:[#allocation8 + $0x20] sm:$0xff]  ;;  %vm856_vm1 = vcmask 195584   ;;  %vm931_vm2 = vcmask 130048  }
  0xab   : > { %1100 = vmatpush1.msra.mxu0 %v1093_v2  ;;  %v852_v9 = vld [vmem:[#allocation8 + $0x30] sm:$0xff]  ;;  %v2254_v10 = vpack.c.bf16 %v853_v7, %v851_v6  ;;  %v855_v12 = vld [vmem:[#allocation8 + $0x48] sm:$0xff]  ;;  %v1253_v13 = vld [vmem:[#allocation8 + $0xb8] sm:$0xff]  ;;  %s3543_s25 = sld [smem:[#allocation34_spill]]  ;;  %s3544_s1 = sld [smem:[#allocation32_spill]]  ;;  %vm1015_vm3 = vcmask 261120  }
  0xac   : > { %s3119_s5 = sshll.u32 %s813_s11, 3  ;;  %1178 = vmatprep.subr.mxu0 %v1174_v4  ;;  %v2256_v11 = vpack.c.bf16 %v852_v9, %v850_v8  ;;  %v1255_v14 = vld [vmem:[#allocation8 + $0xc8] sm:$0xff]  ;;  %v854_v15 = vld [vmem:[#allocation8 + $0x40] sm:$0xff]  ;;  %v1252_v17 = vld [vmem:[#allocation8 + $0xb0] sm:$0xff]  ;;  %s3545_s2 = sld [smem:[#allocation37_spill]]  ;;  %v1577_v4 = vlaneseq }
  0xad   : > { %2255 = vmatprep.subr.bf16.mxu1 %v2254_v10  ;;  %v2270_v16 = vpack.c.bf16 %v1255_v14, %v1253_v13  ;;  %v1254_v18 = vld [vmem:[#allocation8 + $0xc0] sm:$0xff]  ;;  %v846_v19 = vld [vmem:[#allocation8 + $0x8] sm:$0xff]  ;;  %v848_v20 = vld [vmem:[#allocation8 + $0x18] sm:$0xff]  ;;  %s2768_s18 = smov 120   ;;  %s2770_s30 = smov 72  }
  0xae   : > { %s827_s12 = scalar_lea.vmem %s3540_s3, %s3119_s5  ;;  %2257 = vmatpush1.bf16.msra.mxu1 %v2256_v11  ;;  %v845_v21 = vld [vmem:[#allocation8] sm:$0xff]  ;;  %v847_v22 = vld [vmem:[#allocation8 + $0x10] sm:$0xff]  ;;  %v1008_v24 = vld [vmem:[#allocation8 + $0x58] sm:$0xff]  ;;  %v2272_v27 = vpack.c.bf16 %v1254_v18, %v1252_v17  ;;  %v2258_v28 = vpack.c.bf16 %v848_v20, %v846_v19  ;;  %s2773_s27 = smov 64  }
  0xaf   : > { %v3125_v3 = vld [vmem:[%s827_s12] sm:$0xff]  ;;  %s819_s0 = scalar_lea.vmem %s3541_s21, %s3119_s5  ;;  %s831_s7 = scalar_lea.vmem %s3542_s4, %s3119_s5  ;;  %864 = vmatprep.subr.mxu1 %v855_v12  ;;  %v1010_v25 = vld [vmem:[#allocation8 + $0x68] sm:$0xff]  ;;  %v1334_v29 = vld [vmem:[#allocation8 + $0xd8] sm:$0xff]  ;;  %v2260_v31 = vpack.c.bf16 %v847_v22, %v845_v21 }
  0xb0   : > { %2232 = vmatmul.mubr.msk.f32.vlgmr.msra.gmra.mrb[0].mxu0 %vm1095_vm0, %v3125_v3  ;;  %v3138_v23 = vld [vmem:[%s819_s0] sm:$0xff]  ;;  %v1336_v30 = vld [vmem:[#allocation8 + $0xe8] sm:$0xff]  ;;  %v2262_v32 = vpack.c.bf16 %v1010_v25, %v1008_v24  ;;  %v1009_v35 = vld [vmem:[#allocation8 + $0x60] sm:$0xff]  ;;  %s2767_s0 = smov 24   ;;  %s2774_s20 = smov 40  }
  0xb1   : > { %1179 = vmatpush1.msra.mxu0 %v1173_v5  ;;  %1242 = vmatprep.mubr.f32.mxu0 %v2766_v0  ;;  %v3140_v26 = vld [vmem:[%s831_s7] sm:$0xff]  ;;  %v2274_v33 = vpack.c.bf16 %v1336_v30, %v1334_v29  ;;  %s823_s19 = scalar_lea.vmem %s3543_s25, %s3119_s5  ;;  %s815_s10 = scalar_lea.vmem %s3544_s1, %s3119_s5  ;;  %v1335_v37 = vld [vmem:[#allocation8 + $0xe0] sm:$0xff]  ;;  %v1012_v38 = vld [vmem:[#allocation8 + $0x78] sm:$0xff]  ;;  %v1578_v5 = vshrl.u32 %v1577_v4, 7 }
  0xb2   : > { %2271 = vmatprep.subr.bf16.mxu0 %v2270_v16  ;;  %865 = vmatpush1.msra.mxu1 %v854_v15  ;;  %v1007_v34 = vld [vmem:[#allocation8 + $0x50] sm:$0xff]  ;;  %s835_s21 = scalar_lea.vmem %s3545_s2, %s3119_s5  ;;  %v1014_v39 = vld [vmem:[#allocation8 + $0x88] sm:$0xff]  ;;  %v1415_v41 = vld [vmem:[#allocation8 + $0xf8] sm:$0xff]  ;;  %s2772_s7 = smov 56  }
  0xb3   : > { %2229 = vmatmul.mubr.msk.f32.vlgmr.msra.gmra.mrb[0].mxu1 %vm856_vm1, %v3138_v23  ;;  %2259 = vmatprep.subr.bf16.mxu1 %v2258_v28  ;;  %v1333_v36 = vld [vmem:[#allocation8 + $0xd0] sm:$0xff]  ;;  %v1417_v42 = vld [vmem:[#allocation8 + $0x108] sm:$0xff]  ;;  %v2264_v46 = vpack.c.bf16 %v1009_v35, %v1007_v34  ;;  %v2266_v48 = vpack.c.bf16 %v1014_v39, %v1012_v38  ;;  %v1013_v50 = vld [vmem:[#allocation8 + $0x80] sm:$0xff]  ;;  %v1579_v6 = vsub.s32 0, %v1578_v5  ;;  %s3546_s25 = sld [smem:[#allocation40_spill]]  ;;  %v1583_v7 = vsub.s32 1, %v1578_v5 }
  0xb4   : > { %2261 = vmatpush1.bf16.msra.mxu1 %v2260_v31  ;;  %999 = vmatprep.mubr.f32.mxu1 %v2766_v0  ;;  %v1006_v40 = vld [vmem:[%s823_s19] sm:$0xff]  ;;  %v2276_v47 = vpack.c.bf16 %v1335_v37, %v1333_v36  ;;  %v2278_v51 = vpack.c.bf16 %v1417_v42, %v1415_v41  ;;  %v1416_v54 = vld [vmem:[#allocation8 + $0x100] sm:$0xff]  ;;  %v1496_v56 = vld [vmem:[#allocation8 + $0x118] sm:$0xff]  ;;  %s3187_s19 = sshll.u32 %s2967_s13, 7  ;;  %s3547_s11 = sld [smem:[#allocation30_spill]] }
  0xb5   : > { %2263 = vmatprep.subr.bf16.mxu1 %v2262_v32  ;;  %v1494_v43 = vld [vmem:[%s688_s24] sm:$0xff]  ;;  %1605 = vrot.lane.b32.xlu0 %v1006_v40, %s2767_s0  ;;  %v1498_v57 = vld [vmem:[#allocation8 + $0x128] sm:$0xff]  ;;  %s2769_s24 = smov 88   ;;  %v1497_v62 = vld [vmem:[#allocation8 + $0x120] sm:$0xff]  ;;  %s764_s1 = scalar_lea.vmem [#allocation10], %s3093_s15 }
  0xb6   : > { %v844_v44 = vld [vmem:[%s815_s10] sm:$0xff]  ;;  %1671 = vrot.lane.b32.xlu1 %v1494_v43, %s2768_s18  ;;  %v2282_v59 = vpack.c.bf16 %v1498_v57, %v1496_v56  ;;  %v1413_v60 = vld [vmem:[%s679_s23] sm:$0xff]  ;;  %s3548_s13 = sld [smem:[#allocation41_spill]]  ;;  %s1732_s2 = sshll.u32 %s764_s1, 4  ;;  %s1733_s2 = int_to_ptr.vmem [resolvable:$true] %s1732_s2 }
  0xb7   : > { %v1251_v45 = vld [vmem:[%s835_s21] sm:$0xff]  ;;  %s2775_s21 = smov 8   ;;  %s1686_s18 = scalar_lea.sflag [#allocation4], %s3090_s14 }
  0xb8   : > { %2233 = vmatmul.mubr.msk.f32.vlgmr.msra.gmra.mrb[0].mxu0 %vm1095_vm0, %v3140_v26  ;;  %v1011_v49 = vld [vmem:[#allocation8 + $0x70] sm:$0xff] }
  0xb9   : > { %2273 = vmatpush1.bf16.msra.mxu0 %v2272_v27  ;;  %1323 = vmatprep.mubr.f32.mxu0 %v2766_v0  ;;  %v2268_v52 = vpack.c.bf16 %v1013_v50, %v1011_v49  ;;  %v1414_v53 = vld [vmem:[#allocation8 + $0xf0] sm:$0xff] }
  0xba   : > { %2275 = vmatprep.subr.bf16.mxu0 %v2274_v33  ;;  %v1332_v55 = vld [vmem:[%s670_s26] sm:$0xff]  ;;  %1638 = vrot.lane.b32.xlu1 %v1251_v45, %s2770_s30  ;;  %v2280_v58 = vpack.c.bf16 %v1416_v54, %v1414_v53  ;;  %s2771_s26 = smov 104   ;;  %p3549_p12 = scmp.ne.s32.totalorder %s3547_s11, 0 }
  0xbb   : > { %2230 = vmatmul.mubr.msk.f32.vlgmr.msra.gmra.mrb[0].mxu1 %vm931_vm2, %v844_v44  ;;  %1649 = vrot.lane.b32.xlu0 %v1332_v55, %s2769_s24  ;;  %v1495_v61 = vld [vmem:[#allocation8 + $0x110] sm:$0xff]  ;;  %s2532_s24 = scalar_lea.vmem %s1733_s2, 128 }
  0xbc   : > { %2265 = vmatpush1.bf16.msra.mxu1 %v2264_v46  ;;  %1083 = vmatprep.mubr.f32.mxu1 %v2766_v0  ;;  %v2284_v63 = vpack.c.bf16 %v1497_v62, %v1495_v61  ;;  %s3197_s16 = scalar_lea.hbm %s3548_s13, %s3187_s19  ;;  %p2533_p9 = scmp.ne.s32.totalorder %s1733_s2, %s2532_s24 }
  0xbd   : > { %2267 = vmatprep.subr.bf16.mxu1 %v2266_v48 }
  0xbe   : > { %1616 = vrot.lane.b32.xlu1 %v3125_v3, %s2772_s7  ;;  %v1575_v3 = vld [vmem:[%s3546_s25] sm:$0x3]  ;;  %p2534_p6 = pnand %p2533_p9, %p3549_p12 }
  0xbf   : > { %1660 = vrot.lane.b32.xlu0 %v1413_v60, %s2771_s26  ;;  %v1580_v8 = vrot.slane %v1575_v3, %v1579_v6  ;;  %v1584_v10 = vrot.slane %v1575_v3, %v1583_v7 }
  0xc0   : > { %2234 = vmatmul.mubr.msk.f32.vlgmr.msra.gmra.mrb[0].mxu0 %vm931_vm2, %v1251_v45  ;;  %2269 = vmatpush1.bf16.msra.mxu1 %v2268_v52  ;;  %p2535_p3 = pneg %p2534_p6 }
  0xc1   : > { %2277 = vmatpush1.bf16.msra.mxu0 %v2276_v47  ;;  %1404 = vmatprep.mubr.f32.mxu0 %v2766_v0 }
  0xc2   : > { %2279 = vmatprep.subr.bf16.mxu0 %v2278_v51 }
  0xc3   : > { %2231 = vmatmul.mubr.msk.f32.vlgmr.msra.gmra.mrb[0].mxu1 %vm1015_vm3, %v1006_v40  ;;  %1627 = vrot.lane.b32.xlu0 %v3140_v26, %s2773_s27 }
  0xc8   : > { %2235 = vmatmul.mubr.msk.f32.vlgmr.msra.gmra.mrb[0].mxu0 %vm931_vm2, %v1332_v55 }
  0xc9   : > { %2281 = vmatpush1.bf16.msra.mxu0 %v2280_v58  ;;  %1485 = vmatprep.mubr.f32.mxu0 %v2766_v0 }
  0xca   : > { %2283 = vmatprep.subr.bf16.mxu0 %v2282_v59 }
  0xd0   : > { %2236 = vmatmul.mubr.msk.f32.vlgmr.msra.gmra.mrb[0].mxu0 %vm931_vm2, %v1413_v60 }
  0xd1   : > { %2285 = vmatpush1.bf16.msra.mxu0 %v2284_v63  ;;  %1566 = vmatprep.mubr.f32.mxu0 %v2766_v0 }
  0xd8   : > { %2237 = vmatmul.mubr.msk.f32.vlgmr.msra.gmra.mrb[0].mxu0 %vm931_vm2, %v1494_v43 }
 0x127   : > { %v1606_v21 = vpop.permute.xlu0 %1605 }
 0x128   : > { %v1672_v22 = vpop.permute.xlu1 %1671 }
 0x12c   : > { %v1639_v29 = vpop.permute.xlu1 %1638 }
 0x12d   : > { %v1650_v24 = vpop.permute.xlu0 %1649 }
 0x131   : > { %v1661_v30 = vpop.permute.xlu0 %1660 }
 0x196   : > { %v1085_v1 = vpop.f32.mrb[0].mxu1 }
 0x197   : > { %v1087_v2 = vpop.f32.mrb[1].mxu1 }
 0x1ab   : > { %v1568_v9 = vpop.f32.mrb[0].mxu0 }
 0x1ac   : > { %v2286_v11 = vadd.f32 %v1568_v9, %v1085_v1  ;;  %v1570_v12 = vpop.f32.mrb[1].mxu0 }
 0x1ad   : > { %v2287_v13 = vadd.f32 %v1570_v12, %v1087_v2 }
 0x1ae   : > { %v1587_v14 = vadd.f32 %v2286_v11, %v1580_v8 }
 0x1af   : > { %v1588_v0 = vadd.f32 %v2287_v13, %v1584_v10 }
 0x1b0   : > { %v2238_v15 = vmul.f32 -1.442695, %v1587_v14 }
 0x1b1   : > { %v2239_v16 = vmul.f32 -1.442695, %v1588_v0 }
 0x1b2   : > { %2406 = vpow2.f32 %v2238_v15 }
 0x1b3   : > { %2408 = vpow2.f32 %v2239_v16 }
 0x1bc   : > { %v2407_v17 = vpop.eup %2406 }
 0x1bd   : > { %v1595_v18 = vadd.f32 1.0, %v2407_v17  ;;  %v2409_v19 = vpop.eup %2408 }
 0x1be   : > { %v1596_v20 = vadd.f32 1.0, %v2409_v19 }
 0x1bf   : > { %2410 = vrcp.f32 %v1595_v18 }
 0x1c0   : > { %2412 = vrcp.f32 %v1596_v20 }
 0x1c9   : > { %v2411_v25 = vpop.eup %2410 }
 0x1ca   : > { %v1608_v26 = vsub.f32 %v2411_v25, %v1606_v21  ;;  %v1652_v27 = vsub.f32 %v2411_v25, %v1650_v24  ;;  %v1601_v28 = vsub.f32 %v2411_v25, %v3138_v23  ;;  %v1674_v31 = vsub.f32 %v2411_v25, %v1672_v22  ;;  %v2413_v33 = vpop.eup %2412 }
 0x1cb   : > { %v1663_v32 = vsub.f32 %v2411_v25, %v1661_v30 }
 0x1cc   : > { %1654 = vrot.lane.b32.xlu0 %v1652_v27, %s2774_s20  ;;  %1610 = vrot.lane.b32.xlu1 %v1608_v26, %s2771_s26  ;;  %1602 = vst.msk [vmem:[%s764_s1] sm:$0xff] %vm856_vm1, %v1601_v28  ;;  %s2776_s26 = smov [#allocation10]  }
 0x1cd   : > { %s2536_s23 = sshll.u32 %s2776_s26, 4  ;;  %s2537_s23 = int_to_ptr.vmem [resolvable:$false] %s2536_s23 }
 0x1ce   : > { %s2538_s22 = scalar_lea.vmem %s2537_s23, 256  ;;  %p2539_p5 = scmp.lt.s32.totalorder %s1733_s2, %s2537_s23 }
 0x1cf   : > { %p2540_p7 = scmp.lt.s32.totalorder %s2538_s22, %s2532_s24 }
 0x1d0   : > { %1665 = vrot.lane.b32.xlu0 %v1663_v32, %s2767_s0  ;;  %1678 = vrot.lane.b32.xlu1 %v1674_v31, %s2775_s21 }
 0x1d1   : > { %p2541_p11 = por %p2540_p7, %p2539_p5 }
 0x1d3   : > { %p2542_p0 = pnand %p2541_p11, %p2535_p3 }
 0x1d5   : > { %2545 = shalt.err (!%p2542_p0)
}
 0x1d6   : > { %s2546_s0 = scalar_lea.hbm %s3197_s16, 128  ;;  %s2550_s1 = scalar_lea.hbm %s3548_s13, 256 }
 0x1d7   : > { %p2547_p13 = scmp.ne.s32.totalorder %s3197_s16, %s2546_s0  ;;  %p2551_p1 = scmp.lt.u32.totalorder %s3197_s16, %s3548_s13 }
 0x1d8   : > { %p2552_p2 = scmp.lt.u32.totalorder %s2550_s1, %s2546_s0  ;;  %p2554_p9 = scmp.lt.u32.totalorder %s2546_s0, %s3197_s16 }
 0x1d9   : > { %p2548_p10 = pnand %p2547_p13, %p3549_p12 }
 0x1da   : > { %p2553_p4 = por %p2552_p2, %p2551_p1 }
 0x1db   : > { %p2549_p8 = pneg %p2548_p10 }
 0x1dc   : > { %p2555_p6 = por %p2554_p9, %p2553_p4 }
 0x1de   : > { %p2556_p3 = pnand %p2555_p6, %p2549_p8 }
 0x1e0   : > { %2559 = shalt.err (!%p2556_p3)
}
 0x1e1   : > { %2312 = dma.vmem_to_hbm [thread:$0]  (%p3549_p12), %s1733_s2, 128, %s3197_s16, %s1686_s18   ;;  %v1675_v23 = vsub.f32 %v2413_v33, %v1672_v22  ;;  %v1641_v34 = vsub.f32 %v2411_v25, %v1639_v29  ;;  %v1617_v35 = vpop.permute.xlu1 %1616  ;;  %v1628_v36 = vpop.permute.xlu0 %1627 }
 0x1e2   : > { %v1619_v37 = vsub.f32 %v2411_v25, %v1617_v35  ;;  %v1630_v38 = vsub.f32 %v2411_v25, %v1628_v36  ;;  %s771_s24 = scalar_lea.vmem [#allocation11], %s3093_s15  ;;  %s3494_s2 = scalar_lea.vmem [#allocation16], %s3093_s15 }
 0x1e3   : > { %1643 = vrot.lane.b32.xlu1 %v1641_v34, %s2772_s7  ;;  %1680 = vrot.lane.b32.xlu0 %v1675_v23, %s2775_s21  ;;  %s1745_s16 = sshll.u32 %s771_s24, 4  ;;  %s1790_s18 = sshll.u32 %s3494_s2, 4  ;;  %s3234_s16 = int_to_ptr.vmem [resolvable:$true] %s1745_s16  ;;  %s3252_s18 = int_to_ptr.vmem [resolvable:$true] %s1790_s18 }
 0x1e4   : > { %s797_s26 = scalar_lea.vmem [#allocation14], %s3093_s15  ;;  %s3550_s0 = sld [smem:[#allocation42_spill]] }
 0x1e5   : > { %s1777_s23 = sshll.u32 %s797_s26, 4  ;;  %s3551_s20 = sld [smem:[#allocation46_spill]]  ;;  %s3242_s23 = int_to_ptr.vmem [resolvable:$true] %s1777_s23 }
 0x1e6   : > { %s3552_s12 = sld [smem:[#allocation47_spill]]  ;;  %s3495_s7 = scalar_lea.sflag [#allocation12], %s3102_s17 }
 0x1e7   : > { %1621 = vrot.lane.b32.xlu1 %v1619_v37, %s2770_s30  ;;  %1632 = vrot.lane.b32.xlu0 %v1630_v38, %s2773_s27  ;;  %s2560_s25 = scalar_lea.vmem %s3234_s16, 128  ;;  %s2777_s30 = smov [#allocation11]  }
 0x1e8   : > { %p2561_p5 = scmp.ne.s32.totalorder %s3234_s16, %s2560_s25  ;;  %s2564_s2 = sshll.u32 %s2777_s30, 4  ;;  %s2565_s2 = int_to_ptr.vmem [resolvable:$false] %s2564_s2 }
 0x1e9   : > { %s2566_s3 = scalar_lea.vmem %s2565_s2, 256  ;;  %p2567_p0 = scmp.lt.s32.totalorder %s3234_s16, %s2565_s2 }
 0x1ea   : > { %s3232_s21 = scalar_lea.hbm %s3550_s0, %s3187_s19  ;;  %p2562_p7 = pnand %p2561_p5, %p3549_p12 }
 0x1eb   : > { %s3240_s27 = scalar_lea.hbm %s3551_s20, %s3187_s19  ;;  %p2568_p13 = scmp.lt.s32.totalorder %s2566_s3, %s2560_s25 }
 0x1ec   : > { %s3248_s22 = scalar_lea.hbm %s3552_s12, %s3187_s19  ;;  %p2563_p11 = pneg %p2562_p7 }
 0x1ed   : > { %p2569_p10 = por %p2568_p13, %p2567_p0 }
 0x1ef   : > { %p2570_p8 = pnand %p2569_p10, %p2563_p11 }
 0x23e   : > { %v1655_v39 = vpop.permute.xlu0 %1654  ;;  %v1611_v40 = vpop.permute.xlu1 %1610 }
 0x23f   : > { %1657 = vst.msk [vmem:[%s797_s26] sm:$0xff] %vm931_vm2, %v1655_v39 }
 0x240   : > { %1613 = vst.msk [vmem:[%s771_s24] sm:$0xff] %vm1015_vm3, %v1611_v40 }
 0x241   : > { %2573 = shalt.err (!%p2570_p8)
}
 0x242   : > { %s2574_s24 = scalar_lea.hbm %s3232_s21, 128  ;;  %s2578_s10 = scalar_lea.hbm %s3550_s0, 256 }
 0x243   : > { %p2575_p1 = scmp.ne.s32.totalorder %s3232_s21, %s2574_s24  ;;  %p2579_p9 = scmp.lt.u32.totalorder %s3232_s21, %s3550_s0 }
 0x244   : > { %p2580_p6 = scmp.lt.u32.totalorder %s2578_s10, %s2574_s24  ;;  %p2582_p5 = scmp.lt.u32.totalorder %s2574_s24, %s3232_s21 }
 0x245   : > { %p2576_p2 = pnand %p2575_p1, %p3549_p12 }
 0x246   : > { %p2581_p3 = por %p2580_p6, %p2579_p9 }
 0x247   : > { %p2577_p4 = pneg %p2576_p2 }
 0x248   : > { %p2583_p7 = por %p2582_p5, %p2581_p3 }
 0x24a   : > { %p2584_p11 = pnand %p2583_p7, %p2577_p4 }
 0x24c   : > { %2587 = shalt.err (!%p2584_p11)
}
 0x24d   : > { %2313 = dma.vmem_to_hbm [thread:$0]  (%p3549_p12), %s3234_s16, 128, %s3232_s21, %s3495_s7  }
 0x24e   : > { %s1709_s3 = scalar_lea.sflag [#allocation15], %s3102_s17  ;;  %s2588_s25 = scalar_lea.vmem %s3242_s23, 128 }
 0x24f   : > { %p2589_p0 = scmp.ne.s32.totalorder %s3242_s23, %s2588_s25  ;;  %s2778_s24 = smov [#allocation14]  }
 0x250   : > { %s2592_s26 = sshll.u32 %s2778_s24, 4  ;;  %s2593_s26 = int_to_ptr.vmem [resolvable:$false] %s2592_s26 }
 0x251   : > { %p2590_p13 = pnand %p2589_p0, %p3549_p12  ;;  %s2594_s1 = scalar_lea.vmem %s2593_s26, 256 }
 0x252   : > { %p2595_p8 = scmp.lt.s32.totalorder %s3242_s23, %s2593_s26  ;;  %p2596_p1 = scmp.lt.s32.totalorder %s2594_s1, %s2588_s25 }
 0x253   : > { %p2591_p10 = pneg %p2590_p13 }
 0x254   : > { %p2597_p2 = por %p2596_p1, %p2595_p8 }
 0x256   : > { %p2598_p4 = pnand %p2597_p2, %p2591_p10 }
 0x258   : > { %2601 = shalt.err (!%p2598_p4)
}
 0x259   : > { %s2602_s16 = scalar_lea.hbm %s3240_s27, 128  ;;  %s2606_s30 = scalar_lea.hbm %s3551_s20, 256 }
 0x25a   : > { %p2603_p9 = scmp.ne.s32.totalorder %s3240_s27, %s2602_s16  ;;  %p2607_p5 = scmp.lt.u32.totalorder %s3240_s27, %s3551_s20 }
 0x25b   : > { %p2608_p7 = scmp.lt.u32.totalorder %s2606_s30, %s2602_s16  ;;  %p2610_p0 = scmp.lt.u32.totalorder %s2602_s16, %s3240_s27 }
 0x25c   : > { %p2604_p6 = pnand %p2603_p9, %p3549_p12 }
 0x25d   : > { %p2609_p11 = por %p2608_p7, %p2607_p5 }
 0x25e   : > { %p2605_p3 = pneg %p2604_p6 }
 0x25f   : > { %p2611_p13 = por %p2610_p0, %p2609_p11 }
 0x261   : > { %p2612_p10 = pnand %p2611_p13, %p2605_p3 }
 0x263   : > { %2615 = shalt.err (!%p2612_p10)
}
 0x264   : > { %2315 = dma.vmem_to_hbm [thread:$0]  (%p3549_p12), %s3242_s23, 128, %s3240_s27, %s1709_s3   ;;  %v1666_v41 = vpop.permute.xlu0 %1665  ;;  %v1679_v42 = vpop.permute.xlu1 %1678 }
 0x265   : > { %s3496_s25 = scalar_lea.vmem [#allocation13], %s3093_s15  ;;  %s3553_s1 = scalar_lea.vmem [#allocation16], %s3093_s15 }
 0x266   : > { %s3305_s26 = sshll.u32 %s3496_s25, 4  ;;  %1668 = vst.msk [vmem:[%s3553_s1] sm:$0xff] %vm931_vm2, %v1666_v41  ;;  %s3554_s10 = sld [smem:[#allocation45_spill]]  ;;  %s3345_s26 = int_to_ptr.vmem [resolvable:$true] %s3305_s26 }
 0x267   : > { %s3497_s2 = scalar_lea.vmem [#allocation17], %s3093_s15  ;;  %s2616_s23 = scalar_lea.vmem %s3252_s18, 128 }
 0x268   : > { %s3319_s24 = sshll.u32 %s3497_s2, 4  ;;  %p2617_p8 = scmp.ne.s32.totalorder %s3252_s18, %s2616_s23  ;;  %s3354_s24 = int_to_ptr.vmem [resolvable:$true] %s3319_s24 }
 0x269   : > { %s2779_s27 = smov [#allocation16]  }
 0x26a   : > { %p2618_p1 = pnand %p2617_p8, %p3549_p12  ;;  %s2620_s7 = sshll.u32 %s2779_s27, 4  ;;  %s2621_s7 = int_to_ptr.vmem [resolvable:$false] %s2620_s7 }
 0x26b   : > { %s2622_s25 = scalar_lea.vmem %s2621_s7, 256  ;;  %p2623_p4 = scmp.lt.s32.totalorder %s3252_s18, %s2621_s7 }
 0x26c   : > { %s3314_s30 = scalar_lea.hbm %s3554_s10, %s3187_s19  ;;  %p2619_p2 = pneg %p2618_p1 }
 0x26d   : > { %p2624_p9 = scmp.lt.s32.totalorder %s2622_s25, %s2616_s23 }
 0x26f   : > { %p2625_p6 = por %p2624_p9, %p2623_p4 }
 0x271   : > { %p2626_p3 = pnand %p2625_p6, %p2619_p2 }
 0x273   : > { %2629 = shalt.err (!%p2626_p3)
}
 0x274   : > { %s2630_s1 = scalar_lea.hbm %s3248_s22, 128  ;;  %s2634_s27 = scalar_lea.hbm %s3552_s12, 256 }
 0x275   : > { %p2631_p5 = scmp.ne.s32.totalorder %s3248_s22, %s2630_s1  ;;  %p2635_p0 = scmp.lt.u32.totalorder %s3248_s22, %s3552_s12 }
 0x276   : > { %p2636_p13 = scmp.lt.u32.totalorder %s2634_s27, %s2630_s1  ;;  %p2638_p8 = scmp.lt.u32.totalorder %s2630_s1, %s3248_s22 }
 0x277   : > { %p2632_p7 = pnand %p2631_p5, %p3549_p12 }
 0x278   : > { %p2637_p10 = por %p2636_p13, %p2635_p0 }
 0x279   : > { %p2633_p11 = pneg %p2632_p7 }
 0x27a   : > { %p2639_p1 = por %p2638_p8, %p2637_p10 }
 0x27c   : > { %p2640_p2 = pnand %p2639_p1, %p2633_p11 }
 0x27e   : > { %2643 = shalt.err (!%p2640_p2)
}
 0x27f   : > { %2316 = dma.vmem_to_hbm [thread:$0]  (%p3549_p12), %s3252_s18, 128, %s3248_s22, %s1709_s3   ;;  %v1644_v43 = vpop.permute.xlu1 %1643  ;;  %v1681_v44 = vpop.permute.xlu0 %1680 }
 0x280   : > { %s3555_s23 = sld [smem:[#allocation48_spill]]  ;;  %s3556_s16 = scalar_lea.vmem [#allocation13], %s3093_s15  ;;  %v1682_v45 = vsel %vm1095_vm0, %v1679_v42, %v1681_v44 }
 0x281   : > { %1646 = vst.msk [vmem:[%s3556_s16] sm:$0xff] %vm931_vm2, %v1644_v43  ;;  %s3557_s3 = sld [smem:[#allocation43_spill]]  ;;  %s3558_s0 = sld [smem:[#allocation44_spill]] }
 0x282   : > { %s2644_s6 = scalar_lea.vmem %s3345_s26, 128 }
 0x283   : > { %p2645_p4 = scmp.ne.s32.totalorder %s3345_s26, %s2644_s6 }
 0x285   : > { %p2646_p9 = pnand %p2645_p4, %p3549_p12 }
 0x286   : > { %s3351_s1 = scalar_lea.hbm %s3555_s23, %s3187_s19  ;;  %s2780_s19 = smov [#allocation13]  }
 0x287   : > { %s839_s21 = scalar_lea.vmem %s3557_s3, %s3119_s5  ;;  %s843_s4 = scalar_lea.vmem %s3558_s0, %s3119_s5 }
 0x288   : > { %p2647_p6 = pneg %p2646_p9  ;;  %s2648_s25 = sshll.u32 %s2780_s19, 4  ;;  %s2649_s25 = int_to_ptr.vmem [resolvable:$false] %s2648_s25 }
 0x289   : > { %s2650_s2 = scalar_lea.vmem %s2649_s25, 256  ;;  %p2651_p3 = scmp.lt.s32.totalorder %s3345_s26, %s2649_s25 }
 0x28a   : > { %p2652_p5 = scmp.lt.s32.totalorder %s2650_s2, %s2644_s6 }
 0x28c   : > { %p2653_p7 = por %p2652_p5, %p2651_p3 }
 0x28e   : > { %p2654_p11 = pnand %p2653_p7, %p2647_p6 }
 0x290   : > { %2657 = shalt.err (!%p2654_p11)
}
 0x291   : > { %s2658_s16 = scalar_lea.hbm %s3314_s30, 128  ;;  %s2662_s27 = scalar_lea.hbm %s3554_s10, 256 }
 0x292   : > { %p2659_p0 = scmp.ne.s32.totalorder %s3314_s30, %s2658_s16  ;;  %p2663_p8 = scmp.lt.u32.totalorder %s3314_s30, %s3554_s10 }
 0x293   : > { %p2664_p1 = scmp.lt.u32.totalorder %s2662_s27, %s2658_s16  ;;  %p2666_p4 = scmp.lt.u32.totalorder %s2658_s16, %s3314_s30 }
 0x294   : > { %p2660_p13 = pnand %p2659_p0, %p3549_p12 }
 0x295   : > { %p2665_p2 = por %p2664_p1, %p2663_p8 }
 0x296   : > { %p2661_p10 = pneg %p2660_p13 }
 0x297   : > { %p2667_p9 = por %p2666_p4, %p2665_p2 }
 0x299   : > { %p2668_p6 = pnand %p2667_p9, %p2661_p10 }
 0x29b   : > { %2671 = shalt.err (!%p2668_p6)
}
 0x29c   : > { %s3559_s6 = scalar_lea.sflag [#allocation12], %s3102_s17  ;;  %s3560_s25 = scalar_lea.vmem [#allocation17], %s3093_s15 }
 0x29d   : > { %2314 = dma.vmem_to_hbm [thread:$0]  (%p3549_p12), %s3345_s26, 128, %s3314_s30, %s3559_s6   ;;  %1684 = vst.msk [vmem:[%s3560_s25] sm:$0xff] %vm931_vm2, %v1682_v45 }
 0x29e   : > { %s1719_s2 = scalar_lea.sflag [#allocation18], %s3090_s14  ;;  %s2672_s16 = scalar_lea.vmem %s3354_s24, 128 }
 0x29f   : > { %p2673_p3 = scmp.ne.s32.totalorder %s3354_s24, %s2672_s16  ;;  %s2781_s18 = smov [#allocation17]  }
 0x2a0   : > { %s2676_s17 = sshll.u32 %s2781_s18, 4  ;;  %s2677_s17 = int_to_ptr.vmem [resolvable:$false] %s2676_s17 }
 0x2a1   : > { %p2674_p5 = pnand %p2673_p3, %p3549_p12  ;;  %s2678_s22 = scalar_lea.vmem %s2677_s17, 256 }
 0x2a2   : > { %p2679_p11 = scmp.lt.s32.totalorder %s3354_s24, %s2677_s17  ;;  %p2680_p0 = scmp.lt.s32.totalorder %s2678_s22, %s2672_s16 }
 0x2a3   : > { %p2675_p7 = pneg %p2674_p5 }
 0x2a4   : > { %p2681_p13 = por %p2680_p0, %p2679_p11 }
 0x2a6   : > { %p2682_p10 = pnand %p2681_p13, %p2675_p7 }
 0x2a8   : > { %2685 = shalt.err (!%p2682_p10)
}
 0x2a9   : > { %s2686_s14 = scalar_lea.hbm %s3351_s1, 128  ;;  %s2690_s30 = scalar_lea.hbm %s3555_s23, 256 }
 0x2aa   : > { %p2687_p8 = scmp.ne.s32.totalorder %s3351_s1, %s2686_s14  ;;  %p2691_p4 = scmp.lt.u32.totalorder %s3351_s1, %s3555_s23 }
 0x2ab   : > { %p2692_p9 = scmp.lt.u32.totalorder %s2690_s30, %s2686_s14  ;;  %p2694_p3 = scmp.lt.u32.totalorder %s2686_s14, %s3351_s1 }
 0x2ac   : > { %p2688_p1 = pnand %p2687_p8, %p3549_p12 }
 0x2ad   : > { %p2693_p6 = por %p2692_p9, %p2691_p4 }
 0x2ae   : > { %p2689_p2 = pneg %p2688_p1 }
 0x2af   : > { %p2695_p5 = por %p2694_p3, %p2693_p6 }
 0x2b1   : > { %p2696_p7 = pnand %p2695_p5, %p2689_p2 }
 0x2b3   : > { %2699 = shalt.err (!%p2696_p7)
}
 0x2b4   : > { %2317 = dma.vmem_to_hbm [thread:$0]  (%p3549_p12), %s3354_s24, 128, %s3351_s1, %s1719_s2   ;;  %v1622_v46 = vpop.permute.xlu1 %1621  ;;  %v1633_v47 = vpop.permute.xlu0 %1632 }
 0x2b5   : > { %1624 = vst.msk [vmem:[%s839_s21] sm:$0xff] %vm1095_vm0, %v1622_v46  ;;  %1635 = vst.msk [vmem:[%s843_s4] sm:$0xff] %vm1095_vm0, %v1633_v47 }
 0x2b6 PF: > { %s3561_s11 = sld [smem:[#allocation26_spill]]  ;;  %s3562_s18 = sld [smem:[#allocation31_spill]] }
 0x2b7   : > { %s3563_s17 = sld [smem:[#allocation27_spill]] }
 0x2bc   : > { %s1815_s22 = sand.u32 1, %s3561_s11   ;;  %p3564_p12 = scmp.ne.s32.totalorder %s3562_s18, 0 }
 0x2bd   : > { %p3565_p11 = scmp.ge.s32.totalorder %s3563_s17, 2  ;;  %s1816_s24 = scalar_lea.sflag [#allocation4], %s1815_s22 }
 0x2bf   : > { %p2339_p0 = pnand %p3565_p11, %p3564_p12 }
 0x2c1   : > { %2729 = dma.done.wait (!%p2339_p0), %s1816_s24, 128  }
 0x2c2   : > { %2731 = vsyncadd (!%p2339_p0), %s1816_s24, 4294967168  ;;  %s3566_s1 = sadd.s32 4294967294, %s3563_s17  }
 0x2c3   : > { %s1824_s21 = sand.u32 1, %s3566_s1  }
 0x2c4   : > { %s1825_s2 = scalar_lea.sflag [#allocation12], %s1824_s21 }
 0x2c5   : > { %2733 = dma.done.wait (!%p2339_p0), %s1825_s2, 256  }
 0x2c6   : > { %2735 = vsyncadd (!%p2339_p0), %s1825_s2, 4294967040  ;;  %s1857_s14 = scalar_lea.sflag [#allocation15], %s1824_s21 }
 0x2c7   : > { %2737 = dma.done.wait (!%p2339_p0), %s1857_s14, 256  }
 0x2c8   : > { %2739 = vsyncadd (!%p2339_p0), %s1857_s14, 4294967040  ;;  %s1875_s4 = scalar_lea.sflag [#allocation18], %s1815_s22 }
 0x2c9   : > { %2741 = dma.done.wait (!%p2339_p0), %s1875_s4, 128  }
 0x2ca   : > { %2743 = vsyncadd (!%p2339_p0), %s1875_s4, 4294967168  ;;  %s3567_s30 = sld [smem:[#allocation28_spill]]  ;;  %s3568_s5 = sld [smem:[#allocation29_spill]] }
 0x2cb   : > { %s3569_s27 = smov %s2750_s28  ;;  %s3570_s28 = smov %s2754_s29 }
 0x2d0   : > { %p45_p13 = scmp.ge.s32.totalorder %s3567_s30, 4   ;;  %s3571_s29 = smov %s3568_s5 }
 0x2d2   :  { %47 = sbr.rel (!%p45_p13) target bundleno = 32 (0x20), region = 260 }
 0x2d9   :  { %1880 = vsyncpa [#allocation3], 1 }
 0x2da   :  { %1882 = vsyncpa [#allocation3 + $0x1], 1 }
 0x2db   :  { %1883 = vsyncpa [#allocation6], 1 }
 0x2dc   :  { %1885 = vsyncpa [#allocation6 + $0x1], 1 }
 0x2dd   :  { %1886 = vsyncpa [#allocation9], 1 }
 0x2de   :  { %1887 = vsyncpa [#allocation4], 1 }
 0x2df   :  { %1889 = vsyncpa [#allocation4 + $0x1], 1 }
 0x2e0   :  { %1890 = vsyncpa [#allocation12], 1 }
 0x2e1   :  { %1892 = vsyncpa [#allocation12 + $0x1], 1 }
 0x2e2   :  { %1893 = vsyncpa [#allocation15], 1 }
 0x2e3   :  { %1895 = vsyncpa [#allocation15 + $0x1], 1 }
 0x2e4   :  { %1896 = vsyncpa [#allocation18], 1 }
 0x2e5   :  { %1898 = vsyncpa [#allocation18 + $0x1], 1 }

</bundles_post_ra>
